<compile_context>
chip_gen: v7x
topology: tpu7x:2x2x1
jax: 0.10.0
libtpu: 0.0.40
codegen_flags: <defaults>
</compile_context>

<pallas_src>
import functools
import math

import jax
import jax.numpy as jnp
from jax.experimental import pallas as pl
from jax.experimental.pallas import tpu as pltpu

D_IN = 133          # functional-group feature dim (hardcoded in the module)
D_ATT = 32          # attention head dim (hardcoded in the module)
LN_EPS_ATTN = 1e-6  # AttentionLayer LayerNorm eps
LN_EPS_OUT = 1e-5   # final nn.LayerNorm default eps
NEG_INF = -1000000000.0


def _attention_layer(x, neg_masks, wqkv, bqkv, wd, bd, gamma, beta):
    """One AttentionLayer on a block of molecules.

    x: [BM*N, 133] f32 (rows of BM molecules, flattened so dense matmuls get
    a large M).  neg_masks: list of BM boolean [N, N] arrays (True where the
    padding mask is zero), hoisted out because both layers share it.
    """
    BM = len(neg_masks)
    N = x.shape[0] // BM

    # Fused q/k/v projection on the whole molecule block: one 133->96 matmul.
    qkv = jnp.dot(x, wqkv, preferred_element_type=jnp.float32) + bqkv       # [BM*N, 96]
    scale = jnp.float32(1.0 / math.sqrt(D_ATT))

    ctx_rows = []
    for b in range(BM):                     # static, small; attention is per-molecule
        blk = qkv[b * N:(b + 1) * N, :]
        q = blk[:, 0:D_ATT]
        k = blk[:, D_ATT:2 * D_ATT]
        v = blk[:, 2 * D_ATT:3 * D_ATT]

        # scores = q @ k^T / sqrt(d) ; masked_fill(mask == 0, -1e9) — replace
        # semantics preserved exactly (fully padded rows -> uniform softmax).
        s = jax.lax.dot_general(q, k, (((1,), (1,)), ((), ())),
                                preferred_element_type=jnp.float32) * scale
        s = jnp.where(neg_masks[b], jnp.float32(NEG_INF), s)

        m = jnp.max(s, axis=-1, keepdims=True)
        e = jnp.exp(s - m)
        p = e / jnp.sum(e, axis=-1, keepdims=True)          # exact reciprocal
        ctx_rows.append(jnp.dot(p, v, preferred_element_type=jnp.float32))  # [N, 32]

    ctx = jnp.concatenate(ctx_rows, axis=0) if BM > 1 else ctx_rows[0]      # [BM*N, 32]
    hs = jnp.dot(ctx, wd, preferred_element_type=jnp.float32) + bd          # [BM*N, 133]
    # TODO(synk): nn.Dropout(0.1) treated as identity (inference / eval mode).

    # residual + LayerNorm(133, eps=1e-6)
    y = hs + x
    mu = jnp.mean(y, axis=-1, keepdims=True)
    var = jnp.mean((y - mu) * (y - mu), axis=-1, keepdims=True)
    return (y - mu) * jax.lax.rsqrt(var + LN_EPS_ATTN) * gamma + beta


def prompt_generator_kernel(fg_ref, idx_ref, wqkv_ref, bqkv_ref, wd_ref,
                            vec133_ref, wlin_ref, vecH_ref, out_ref, *, hidden_size):
    BM, K, D = idx_ref.shape
    N = fg_ref.shape[0] // BM
    Hp = wlin_ref.shape[1]

    # ---- unpack the packed parameter slabs (static slices, no extra DMAs) ----
    cls = vec133_ref[0:1, :]
    bd1, g1, b1 = vec133_ref[1:2, :], vec133_ref[2:3, :], vec133_ref[3:4, :]
    bd2, g2, b2 = vec133_ref[4:5, :], vec133_ref[5:6, :], vec133_ref[6:7, :]
    wqkv1, wqkv2 = wqkv_ref[0], wqkv_ref[1]
    bqkv1, bqkv2 = bqkv_ref[0:1, :], bqkv_ref[1:2, :]
    wd1, wd2 = wd_ref[0], wd_ref[1]
    wlin = wlin_ref[...]
    blin, gn, bn = vecH_ref[0:1, :], vecH_ref[1:2, :], vecH_ref[2:3, :]

    row_id = jax.lax.broadcasted_iota(jnp.int32, (N, D), 0)   # hoisted out of loops
    cls_bcast = jnp.broadcast_to(cls, (N, D))

    # ---- per-molecule scatter_(0, fg_indexs, cls) + shared padding mask ------
    fg_rows, neg_masks, idx_list = [], [], []
    for b in range(BM):
        fgb = fg_ref[b * N:(b + 1) * N, :]
        idxb = idx_ref[b]                                     # [K, 133] int32
        hit = row_id == idxb[0:1, :]
        for i in range(1, K):
            hit = jnp.logical_or(hit, row_id == idxb[i:i + 1, :])
        fgb = jnp.where(hit, cls_bcast, fgb)
        fg_rows.append(fgb)
        idx_list.append(idxb)

        # padding_mask = (fg != 0) + 0.0 ; mask = pm @ pm^T, computed ONCE and
        # reused by both attention layers (both take init = fg).
        pm = (fgb != 0.0).astype(jnp.float32)
        mask = jax.lax.dot_general(pm, pm, (((1,), (1,)), ((), ())),
                                   preferred_element_type=jnp.float32)
        neg_masks.append(mask == 0.0)

    fg = jnp.concatenate(fg_rows, axis=0) if BM > 1 else fg_rows[0]          # [BM*N, 133]

    # ---- two attention layers -----------------------------------------------
    h1 = _attention_layer(fg, neg_masks, wqkv1, bqkv1, wd1, bd1, g1, b1)
    h2 = _attention_layer(h1, neg_masks, wqkv2, bqkv2, wd2, bd2, g2, b2)

    # ---- torch.gather(h2, 0, fg_indexs): masked row-sums, single concat ------
    cls_rows = []
    for b in range(BM):
        h2b = h2[b * N:(b + 1) * N, :]
        idxb = idx_list[b]
        for i in range(K):
            sel = row_id == idxb[i:i + 1, :]
            cls_rows.append(jnp.sum(jnp.where(sel, h2b, 0.0), axis=0, keepdims=True))
    cls_h = jnp.concatenate(cls_rows, axis=0) if len(cls_rows) > 1 else cls_rows[0]

    # ---- Linear(133 -> hidden) + LayerNorm(hidden), lane-padded to Hp --------
    lin = jnp.dot(cls_h, wlin, preferred_element_type=jnp.float32) + blin    # [BM*K, Hp]
    lane = jax.lax.broadcasted_iota(jnp.int32, lin.shape, 1)
    valid = lane < hidden_size
    inv_h = jnp.float32(1.0 / hidden_size)
    mu = jnp.sum(jnp.where(valid, lin, 0.0), axis=-1, keepdims=True) * inv_h
    dev = jnp.where(valid, lin - mu, 0.0)
    var = jnp.sum(dev * dev, axis=-1, keepdims=True) * inv_h
    y = (lin - mu) * jax.lax.rsqrt(var + LN_EPS_OUT) * gn + bn   # padded lanes: gn=bn=0

    for b in range(BM):
        out_ref[b, :, :] = y[b * K:(b + 1) * K, :]


def prompt_generator(fg_states, fg_indexs, params, *, block_molecules=None):
    """fg_states: [B, N, 133] (or [N, 133]) f32, fg_indexs: [B, K, 133] (or [K, 133]) int.

    Returns [B, K, hidden] (or [K, hidden]) f32, identical per-molecule to the
    PyTorch Prompt_generator forward.
    """
    squeeze = fg_states.ndim == 2
    if squeeze:
        fg_states = fg_states[None]
        fg_indexs = fg_indexs[None]
    B, N, D = fg_states.shape
    assert D == D_IN
    K = fg_indexs.shape[1]
    H = params["w_lin"].shape[1]
    Hp = max(128, ((H + 127) // 128) * 128)     # lane-dense output stores

    # Molecules per grid step (grid axis is "parallel" -> shards across TCs).
    BM = B if block_molecules is None else max(1, min(int(block_molecules), B))
    while B % BM != 0:
        BM -= 1
    if (BM * N) % 8 != 0:
        BM = B          # full-extent block is always layout-legal
    num_blocks = B // BM

    fg_flat = fg_states.reshape(B * N, D).astype(jnp.float32)
    idx3 = fg_indexs.astype(jnp.int32)

    def pad_h(a):
        return jnp.pad(a, ((0, 0), (0, Hp - H))) if Hp != H else a

    # Pack parameters into a handful of operands (few DMAs instead of ~19).
    wqkv_pk = jnp.stack([params["attn1"]["wqkv"], params["attn2"]["wqkv"]])          # [2,133,96]
    bqkv_pk = jnp.concatenate([params["attn1"]["bqkv"], params["attn2"]["bqkv"]], 0)  # [2,96]
    wd_pk = jnp.stack([params["attn1"]["wd"], params["attn2"]["wd"]])                 # [2,32,133]
    vec133 = jnp.concatenate(
        [params["cls"],
         params["attn1"]["bd"], params["attn1"]["gamma"], params["attn1"]["beta"],
         params["attn2"]["bd"], params["attn2"]["gamma"], params["attn2"]["beta"]], 0)  # [7,133]
    w_lin_p = pad_h(params["w_lin"])                                                   # [133,Hp]
    vecH = jnp.concatenate(
        [pad_h(params["b_lin"]), pad_h(params["gamma_n"]), pad_h(params["beta_n"])], 0)  # [3,Hp]

    const2 = lambda i: (0, 0)
    const3 = lambda i: (0, 0, 0)

    out = pl.pallas_call(
        functools.partial(prompt_generator_kernel, hidden_size=H),
        out_shape=jax.ShapeDtypeStruct((B, K, Hp), jnp.float32),
        grid=(num_blocks,),
        in_specs=[
            pl.BlockSpec((BM * N, D), lambda i: (i, 0)),       # molecule-block rows
            pl.BlockSpec((BM, K, D), lambda i: (i, 0, 0)),     # molecule-block indices
            pl.BlockSpec(wqkv_pk.shape, const3),               # params: constant-indexed,
            pl.BlockSpec(bqkv_pk.shape, const2),               # copied to VMEM once
            pl.BlockSpec(wd_pk.shape, const3),
            pl.BlockSpec(vec133.shape, const2),
            pl.BlockSpec(w_lin_p.shape, const2),
            pl.BlockSpec(vecH.shape, const2),
        ],
        out_specs=pl.BlockSpec((BM, K, Hp), lambda i: (i, 0, 0)),
        compiler_params=pltpu.CompilerParams(
            dimension_semantics=("parallel",)),
    )(fg_flat, idx3, wqkv_pk, bqkv_pk, wd_pk, vec133, w_lin_p, vecH)

    out = out[:, :, :H]          # strip the lane padding on the host
    return out[0] if squeeze else out


def init_params(key, hidden_size):
    """Deterministic parameter init (PyTorch-like uniform bounds); QKV pre-fused."""
    keys = jax.random.split(key, 20)
    it = iter(keys)

    def linear(fan_in, fan_out):
        bound = 1.0 / math.sqrt(fan_in)
        w = jax.random.uniform(next(it), (fan_in, fan_out), jnp.float32, -bound, bound)
        b = jax.random.uniform(next(it), (1, fan_out), jnp.float32, -bound, bound)
        return w, b

    def attn_params():
        wq, bq = linear(D_IN, D_ATT)
        wk, bk = linear(D_IN, D_ATT)
        wv, bv = linear(D_IN, D_ATT)
        wd, bd = linear(D_ATT, D_IN)
        return dict(
            wqkv=jnp.concatenate([wq, wk, wv], axis=1),   # [133, 96] fused QKV
            bqkv=jnp.concatenate([bq, bk, bv], axis=1),   # [1, 96]
            wd=wd, bd=bd,
            gamma=jnp.ones((1, D_IN), jnp.float32),
            beta=jnp.zeros((1, D_IN), jnp.float32),
        )

    attn1 = attn_params()
    attn2 = attn_params()
    w_lin, b_lin = linear(D_IN, hidden_size)
    cls = jax.random.normal(next(it), (1, D_IN), jnp.float32)
    return dict(cls=cls, attn1=attn1, attn2=attn2, w_lin=w_lin, b_lin=b_lin,
                gamma_n=jnp.ones((1, hidden_size), jnp.float32),
                beta_n=jnp.zeros((1, hidden_size), jnp.float32))


def reference(fg_states, fg_indexs, p):
    """Pure-JAX single-molecule reference mirroring the PyTorch forward."""
    K, D = fg_indexs.shape
    cols = jnp.broadcast_to(jnp.arange(D)[None, :], (K, D))
    fg = fg_states.at[fg_indexs, cols].set(jnp.broadcast_to(p["cls"], (K, D)))

    def attn(x, init, a):
        qkv = x @ a["wqkv"] + a["bqkv"]
        q, k, v = qkv[:, :D_ATT], qkv[:, D_ATT:2 * D_ATT], qkv[:, 2 * D_ATT:]
        pm = (init != 0.0).astype(jnp.float32)
        mask = pm @ pm.T
        s = q @ k.T / math.sqrt(D_ATT)
        s = jnp.where(mask == 0.0, NEG_INF, s)
        w = jax.nn.softmax(s, axis=-1)
        hs = (w @ v) @ a["wd"] + a["bd"]
        y = hs + x
        mu = jnp.mean(y, -1, keepdims=True)
        var = jnp.mean((y - mu) ** 2, -1, keepdims=True)
        return (y - mu) / jnp.sqrt(var + LN_EPS_ATTN) * a["gamma"] + a["beta"]

    h1 = attn(fg, fg, p["attn1"])
    h2 = attn(h1, fg, p["attn2"])
    cls_h = jnp.take_along_axis(h2, fg_indexs, axis=0)
    lin = cls_h @ p["w_lin"] + p["b_lin"]
    mu = jnp.mean(lin, -1, keepdims=True)
    var = jnp.mean((lin - mu) ** 2, -1, keepdims=True)
    return (lin - mu) / jnp.sqrt(var + LN_EPS_OUT) * p["gamma_n"] + p["beta_n"]


if __name__ == "__main__":
    key = jax.random.PRNGKey(0)
    k_param, k_fg = jax.random.split(key, 2)

    B = 4     # molecules in the batch
    N = 8     # functional-group tokens per molecule
    K = 2     # cls positions per molecule
    H = 64    # Prompt_generator hidden_size

    params = init_params(k_param, H)

    fg_states = jax.random.normal(k_fg, (B, N, D_IN), jnp.float32)
    fg_states = fg_states.at[:, N - 2:, :].set(0.0)   # padded rows -> exercise the mask
    # fg_indexs: row index per element (torch.scatter_/gather along dim 0 semantics).
    fg_indexs = jnp.stack([
        jnp.stack([jnp.full((D_IN,), b % 3, jnp.int32),
                   jnp.full((D_IN,), 4, jnp.int32)], axis=0)
        for b in range(B)], axis=0)                    # [B, K, 133]

    out = prompt_generator(fg_states, fg_indexs, params, block_molecules=2)
    out = jax.block_until_ready(out)

    with jax.default_matmul_precision("highest"):
        ref = jnp.stack([reference(fg_states[b], fg_indexs[b], params) for b in range(B)])

    assert out.shape == (B, K, H)
    assert bool(jnp.all(jnp.isfinite(out)))
    err = float(jnp.max(jnp.abs(out - ref)))
    # Exact softmax reciprocal now used -> much tighter tolerance than before.
    assert jnp.allclose(out, ref, atol=5e-3, rtol=5e-3), (
        f"mismatch vs reference, max abs err = {err}")

    print("KERNEL_OK")
</pallas_src>

<mosaic_0001>
module attributes {stable_mosaic.version = 11 : i64} {
  func.func @prompt_generator_kernel(%arg0: i32, %arg1: memref<16x133xf32, #tpu.memory_space<vmem>>, %arg2: memref<2x2x133xi32, #tpu.memory_space<vmem>>, %arg3: memref<2x133x96xf32, #tpu.memory_space<vmem>>, %arg4: memref<2x96xf32, #tpu.memory_space<vmem>>, %arg5: memref<2x32x133xf32, #tpu.memory_space<vmem>>, %arg6: memref<7x133xf32, #tpu.memory_space<vmem>>, %arg7: memref<133x128xf32, #tpu.memory_space<vmem>>, %arg8: memref<3x128xf32, #tpu.memory_space<vmem>>, %arg9: memref<2x2x128xf32, #tpu.memory_space<vmem>>) attributes {dimension_semantics = [#tpu.dimension_semantics<parallel>], iteration_bounds = array<i64: 2>, scalar_prefetch = 0 : i64, scratch_operands = 0 : i64, tpu.core_type = #tpu.core_type<tc>, window_params = [{transform_indices = @transform_0, window_bounds = array<i64: 16, 133>}, {transform_indices = @transform_1, window_bounds = array<i64: 2, 2, 133>}, {pipeline_mode = #tpu.pipeline_mode<synchronous>, transform_indices = @transform_2, window_bounds = array<i64: 2, 133, 96>}, {pipeline_mode = #tpu.pipeline_mode<synchronous>, transform_indices = @transform_3, window_bounds = array<i64: 2, 96>}, {pipeline_mode = #tpu.pipeline_mode<synchronous>, transform_indices = @transform_4, window_bounds = array<i64: 2, 32, 133>}, {pipeline_mode = #tpu.pipeline_mode<synchronous>, transform_indices = @transform_5, window_bounds = array<i64: 7, 133>}, {pipeline_mode = #tpu.pipeline_mode<synchronous>, transform_indices = @transform_6, window_bounds = array<i64: 133, 128>}, {pipeline_mode = #tpu.pipeline_mode<synchronous>, transform_indices = @transform_7, window_bounds = array<i64: 3, 128>}, {transform_indices = @transform_8, window_bounds = array<i64: 2, 2, 128>}]} {
    %c0 = arith.constant 0 : index
    %c0_0 = arith.constant 0 : index
    %0 = vector.load %arg6[%c0, %c0_0] : memref<7x133xf32, #tpu.memory_space<vmem>>, vector<1x133xf32>
    %c1 = arith.constant 1 : index
    %c0_1 = arith.constant 0 : index
    %1 = vector.load %arg6[%c1, %c0_1] : memref<7x133xf32, #tpu.memory_space<vmem>>, vector<1x133xf32>
    %c2 = arith.constant 2 : index
    %c0_2 = arith.constant 0 : index
    %2 = vector.load %arg6[%c2, %c0_2] : memref<7x133xf32, #tpu.memory_space<vmem>>, vector<1x133xf32>
    %c3 = arith.constant 3 : index
    %c0_3 = arith.constant 0 : index
    %3 = vector.load %arg6[%c3, %c0_3] : memref<7x133xf32, #tpu.memory_space<vmem>>, vector<1x133xf32>
    %c4 = arith.constant 4 : index
    %c0_4 = arith.constant 0 : index
    %4 = vector.load %arg6[%c4, %c0_4] : memref<7x133xf32, #tpu.memory_space<vmem>>, vector<1x133xf32>
    %c5 = arith.constant 5 : index
    %c0_5 = arith.constant 0 : index
    %5 = vector.load %arg6[%c5, %c0_5] : memref<7x133xf32, #tpu.memory_space<vmem>>, vector<1x133xf32>
    %c6 = arith.constant 6 : index
    %c0_6 = arith.constant 0 : index
    %6 = vector.load %arg6[%c6, %c0_6] : memref<7x133xf32, #tpu.memory_space<vmem>>, vector<1x133xf32>
    %c0_7 = arith.constant 0 : index
    %c0_8 = arith.constant 0 : index
    %c0_9 = arith.constant 0 : index
    %7 = vector.load %arg3[%c0_7, %c0_8, %c0_9] : memref<2x133x96xf32, #tpu.memory_space<vmem>>, vector<1x133x96xf32>
    %8 = vector.shape_cast %7 : vector<1x133x96xf32> to vector<133x96xf32>
    %c1_10 = arith.constant 1 : index
    %c0_11 = arith.constant 0 : index
    %c0_12 = arith.constant 0 : index
    %9 = vector.load %arg3[%c1_10, %c0_11, %c0_12] : memref<2x133x96xf32, #tpu.memory_space<vmem>>, vector<1x133x96xf32>
    %10 = vector.shape_cast %9 : vector<1x133x96xf32> to vector<133x96xf32>
    %c0_13 = arith.constant 0 : index
    %c0_14 = arith.constant 0 : index
    %11 = vector.load %arg4[%c0_13, %c0_14] : memref<2x96xf32, #tpu.memory_space<vmem>>, vector<1x96xf32>
    %c1_15 = arith.constant 1 : index
    %c0_16 = arith.constant 0 : index
    %12 = vector.load %arg4[%c1_15, %c0_16] : memref<2x96xf32, #tpu.memory_space<vmem>>, vector<1x96xf32>
    %c0_17 = arith.constant 0 : index
    %c0_18 = arith.constant 0 : index
    %c0_19 = arith.constant 0 : index
    %13 = vector.load %arg5[%c0_17, %c0_18, %c0_19] : memref<2x32x133xf32, #tpu.memory_space<vmem>>, vector<1x32x133xf32>
    %14 = vector.shape_cast %13 : vector<1x32x133xf32> to vector<32x133xf32>
    %c1_20 = arith.constant 1 : index
    %c0_21 = arith.constant 0 : index
    %c0_22 = arith.constant 0 : index
    %15 = vector.load %arg5[%c1_20, %c0_21, %c0_22] : memref<2x32x133xf32, #tpu.memory_space<vmem>>, vector<1x32x133xf32>
    %16 = vector.shape_cast %15 : vector<1x32x133xf32> to vector<32x133xf32>
    %c0_23 = arith.constant 0 : index
    %c0_24 = arith.constant 0 : index
    %17 = vector.load %arg7[%c0_23, %c0_24] : memref<133x128xf32, #tpu.memory_space<vmem>>, vector<133x128xf32>
    %c0_25 = arith.constant 0 : index
    %c0_26 = arith.constant 0 : index
    %18 = vector.load %arg8[%c0_25, %c0_26] : memref<3x128xf32, #tpu.memory_space<vmem>>, vector<1x128xf32>
    %c1_27 = arith.constant 1 : index
    %c0_28 = arith.constant 0 : index
    %19 = vector.load %arg8[%c1_27, %c0_28] : memref<3x128xf32, #tpu.memory_space<vmem>>, vector<1x128xf32>
    %c2_29 = arith.constant 2 : index
    %c0_30 = arith.constant 0 : index
    %20 = vector.load %arg8[%c2_29, %c0_30] : memref<3x128xf32, #tpu.memory_space<vmem>>, vector<1x128xf32>
    %21 = tpu.iota {dimensions = array<i32: 0>} : vector<8x133xi32>
    %22 = vector.shape_cast %0 : vector<1x133xf32> to vector<1x133xf32>
    %23 = vector.broadcast %22 : vector<1x133xf32> to vector<8x133xf32>
    %c0_31 = arith.constant 0 : index
    %c0_32 = arith.constant 0 : index
    %24 = vector.load %arg1[%c0_31, %c0_32] : memref<16x133xf32, #tpu.memory_space<vmem>>, vector<8x133xf32>
    %c0_33 = arith.constant 0 : index
    %c0_34 = arith.constant 0 : index
    %c0_35 = arith.constant 0 : index
    %25 = vector.load %arg2[%c0_33, %c0_34, %c0_35] : memref<2x2x133xi32, #tpu.memory_space<vmem>>, vector<1x2x133xi32>
    %26 = vector.shape_cast %25 : vector<1x2x133xi32> to vector<2x133xi32>
    %27 = vector.extract_strided_slice %26 {offsets = [0, 0], sizes = [1, 133], strides = [1, 1]} : vector<2x133xi32> to vector<1x133xi32>
    %28 = vector.broadcast %27 : vector<1x133xi32> to vector<8x133xi32>
    %29 = arith.cmpi eq, %21, %28 : vector<8x133xi32>
    %30 = vector.extract_strided_slice %26 {offsets = [1, 0], sizes = [1, 133], strides = [1, 1]} : vector<2x133xi32> to vector<1x133xi32>
    %31 = vector.broadcast %30 : vector<1x133xi32> to vector<8x133xi32>
    %32 = arith.cmpi eq, %21, %31 : vector<8x133xi32>
    %33 = arith.ori %29, %32 : vector<8x133xi1>
    %34 = arith.select %33, %23, %24 : vector<8x133xi1>, vector<8x133xf32>
    %cst = arith.constant 0.000000e+00 : f32
    %35 = vector.broadcast %cst : f32 to vector<8x133xf32>
    %36 = arith.cmpf one, %34, %35 : vector<8x133xf32>
    %37 = arith.extui %36 : vector<8x133xi1> to vector<8x133xi32>
    %38 = arith.sitofp %37 : vector<8x133xi32> to vector<8x133xf32>
    %cst_36 = arith.constant dense<0.000000e+00> : vector<8x8xf32>
    %39 = tpu.matmul %38, %38, %cst_36 {dimension_numbers = #tpu.dot_dimension_numbers<[1], [1], [0], [0], [0, 0, 1, 0], [], []>} : vector<8x133xf32>, vector<8x133xf32>, vector<8x8xf32> -> vector<8x8xf32>
    %cst_37 = arith.constant 0.000000e+00 : f32
    %40 = vector.broadcast %cst_37 : f32 to vector<8x8xf32>
    %41 = arith.cmpf oeq, %39, %40 : vector<8x8xf32>
    %c8 = arith.constant 8 : index
    %c0_38 = arith.constant 0 : index
    %42 = vector.load %arg1[%c8, %c0_38] : memref<16x133xf32, #tpu.memory_space<vmem>>, vector<8x133xf32>
    %c1_39 = arith.constant 1 : index
    %c0_40 = arith.constant 0 : index
    %c0_41 = arith.constant 0 : index
    %43 = vector.load %arg2[%c1_39, %c0_40, %c0_41] : memref<2x2x133xi32, #tpu.memory_space<vmem>>, vector<1x2x133xi32>
    %44 = vector.shape_cast %43 : vector<1x2x133xi32> to vector<2x133xi32>
    %45 = vector.extract_strided_slice %44 {offsets = [0, 0], sizes = [1, 133], strides = [1, 1]} : vector<2x133xi32> to vector<1x133xi32>
    %46 = vector.broadcast %45 : vector<1x133xi32> to vector<8x133xi32>
    %47 = arith.cmpi eq, %21, %46 : vector<8x133xi32>
    %48 = vector.extract_strided_slice %44 {offsets = [1, 0], sizes = [1, 133], strides = [1, 1]} : vector<2x133xi32> to vector<1x133xi32>
    %49 = vector.broadcast %48 : vector<1x133xi32> to vector<8x133xi32>
    %50 = arith.cmpi eq, %21, %49 : vector<8x133xi32>
    %51 = arith.ori %47, %50 : vector<8x133xi1>
    %52 = arith.select %51, %23, %42 : vector<8x133xi1>, vector<8x133xf32>
    %cst_42 = arith.constant 0.000000e+00 : f32
    %53 = vector.broadcast %cst_42 : f32 to vector<8x133xf32>
    %54 = arith.cmpf one, %52, %53 : vector<8x133xf32>
    %55 = arith.extui %54 : vector<8x133xi1> to vector<8x133xi32>
    %56 = arith.sitofp %55 : vector<8x133xi32> to vector<8x133xf32>
    %cst_43 = arith.constant dense<0.000000e+00> : vector<8x8xf32>
    %57 = tpu.matmul %56, %56, %cst_43 {dimension_numbers = #tpu.dot_dimension_numbers<[1], [1], [0], [0], [0, 0, 1, 0], [], []>} : vector<8x133xf32>, vector<8x133xf32>, vector<8x8xf32> -> vector<8x8xf32>
    %cst_44 = arith.constant 0.000000e+00 : f32
    %58 = vector.broadcast %cst_44 : f32 to vector<8x8xf32>
    %59 = arith.cmpf oeq, %57, %58 : vector<8x8xf32>
    %60 = tpu.concatenate %34, %52 in 0 : vector<8x133xf32>, vector<8x133xf32> -> vector<16x133xf32>
    %cst_45 = arith.constant dense<0.000000e+00> : vector<16x96xf32>
    %61 = tpu.matmul %60, %8, %cst_45 {dimension_numbers = #tpu.dot_dimension_numbers<[1], [0], [0], [1], [0, 0, 1, 1], [], []>} : vector<16x133xf32>, vector<133x96xf32>, vector<16x96xf32> -> vector<16x96xf32>
    %62 = vector.broadcast %11 : vector<1x96xf32> to vector<16x96xf32>
    %63 = arith.addf %61, %62 : vector<16x96xf32>
    %64 = vector.extract_strided_slice %63 {offsets = [0, 0], sizes = [8, 96], strides = [1, 1]} : vector<16x96xf32> to vector<8x96xf32>
    %65 = vector.extract_strided_slice %64 {offsets = [0, 0], sizes = [8, 32], strides = [1, 1]} : vector<8x96xf32> to vector<8x32xf32>
    %66 = vector.extract_strided_slice %64 {offsets = [0, 32], sizes = [8, 32], strides = [1, 1]} : vector<8x96xf32> to vector<8x32xf32>
    %67 = vector.extract_strided_slice %64 {offsets = [0, 64], sizes = [8, 32], strides = [1, 1]} : vector<8x96xf32> to vector<8x32xf32>
    %cst_46 = arith.constant dense<0.000000e+00> : vector<8x8xf32>
    %68 = tpu.matmul %65, %66, %cst_46 {dimension_numbers = #tpu.dot_dimension_numbers<[1], [1], [0], [0], [0, 0, 1, 0], [], []>} : vector<8x32xf32>, vector<8x32xf32>, vector<8x8xf32> -> vector<8x8xf32>
    %cst_47 = arith.constant 0.176776692 : f32
    %69 = vector.broadcast %cst_47 : f32 to vector<8x8xf32>
    %70 = arith.mulf %68, %69 : vector<8x8xf32>
    %cst_48 = arith.constant -1.000000e+09 : f32
    %71 = vector.broadcast %cst_48 : f32 to vector<8x8xf32>
    %72 = arith.select %41, %71, %70 : vector<8x8xi1>, vector<8x8xf32>
    %cst_49 = arith.constant dense<0xFF800000> : vector<8xf32>
    %73 = vector.multi_reduction <maximumf>, %72, %cst_49 [1] : vector<8x8xf32> to vector<8xf32>
    %74 = vector.shape_cast %73 : vector<8xf32> to vector<8x1xf32>
    %75 = vector.broadcast %74 : vector<8x1xf32> to vector<8x8xf32>
    %76 = arith.subf %72, %75 : vector<8x8xf32>
    %77 = math.exp %76 : vector<8x8xf32>
    %cst_50 = arith.constant dense<0.000000e+00> : vector<8xf32>
    %78 = vector.multi_reduction <add>, %77, %cst_50 [1] : vector<8x8xf32> to vector<8xf32>
    %79 = vector.shape_cast %78 : vector<8xf32> to vector<8x1xf32>
    %80 = vector.broadcast %79 : vector<8x1xf32> to vector<8x8xf32>
    %81 = arith.divf %77, %80 : vector<8x8xf32>
    %cst_51 = arith.constant dense<0.000000e+00> : vector<8x32xf32>
    %82 = tpu.matmul %81, %67, %cst_51 {dimension_numbers = #tpu.dot_dimension_numbers<[1], [0], [0], [1], [0, 0, 1, 1], [], []>} : vector<8x8xf32>, vector<8x32xf32>, vector<8x32xf32> -> vector<8x32xf32>
    %83 = vector.extract_strided_slice %63 {offsets = [8, 0], sizes = [8, 96], strides = [1, 1]} : vector<16x96xf32> to vector<8x96xf32>
    %84 = vector.extract_strided_slice %83 {offsets = [0, 0], sizes = [8, 32], strides = [1, 1]} : vector<8x96xf32> to vector<8x32xf32>
    %85 = vector.extract_strided_slice %83 {offsets = [0, 32], sizes = [8, 32], strides = [1, 1]} : vector<8x96xf32> to vector<8x32xf32>
    %86 = vector.extract_strided_slice %83 {offsets = [0, 64], sizes = [8, 32], strides = [1, 1]} : vector<8x96xf32> to vector<8x32xf32>
    %cst_52 = arith.constant dense<0.000000e+00> : vector<8x8xf32>
    %87 = tpu.matmul %84, %85, %cst_52 {dimension_numbers = #tpu.dot_dimension_numbers<[1], [1], [0], [0], [0, 0, 1, 0], [], []>} : vector<8x32xf32>, vector<8x32xf32>, vector<8x8xf32> -> vector<8x8xf32>
    %cst_53 = arith.constant 0.176776692 : f32
    %88 = vector.broadcast %cst_53 : f32 to vector<8x8xf32>
    %89 = arith.mulf %87, %88 : vector<8x8xf32>
    %cst_54 = arith.constant -1.000000e+09 : f32
    %90 = vector.broadcast %cst_54 : f32 to vector<8x8xf32>
    %91 = arith.select %59, %90, %89 : vector<8x8xi1>, vector<8x8xf32>
    %cst_55 = arith.constant dense<0xFF800000> : vector<8xf32>
    %92 = vector.multi_reduction <maximumf>, %91, %cst_55 [1] : vector<8x8xf32> to vector<8xf32>
    %93 = vector.shape_cast %92 : vector<8xf32> to vector<8x1xf32>
    %94 = vector.broadcast %93 : vector<8x1xf32> to vector<8x8xf32>
    %95 = arith.subf %91, %94 : vector<8x8xf32>
    %96 = math.exp %95 : vector<8x8xf32>
    %cst_56 = arith.constant dense<0.000000e+00> : vector<8xf32>
    %97 = vector.multi_reduction <add>, %96, %cst_56 [1] : vector<8x8xf32> to vector<8xf32>
    %98 = vector.shape_cast %97 : vector<8xf32> to vector<8x1xf32>
    %99 = vector.broadcast %98 : vector<8x1xf32> to vector<8x8xf32>
    %100 = arith.divf %96, %99 : vector<8x8xf32>
    %cst_57 = arith.constant dense<0.000000e+00> : vector<8x32xf32>
    %101 = tpu.matmul %100, %86, %cst_57 {dimension_numbers = #tpu.dot_dimension_numbers<[1], [0], [0], [1], [0, 0, 1, 1], [], []>} : vector<8x8xf32>, vector<8x32xf32>, vector<8x32xf32> -> vector<8x32xf32>
    %102 = tpu.concatenate %82, %101 in 0 : vector<8x32xf32>, vector<8x32xf32> -> vector<16x32xf32>
    %cst_58 = arith.constant dense<0.000000e+00> : vector<16x133xf32>
    %103 = tpu.matmul %102, %14, %cst_58 {dimension_numbers = #tpu.dot_dimension_numbers<[1], [0], [0], [1], [0, 0, 1, 1], [], []>} : vector<16x32xf32>, vector<32x133xf32>, vector<16x133xf32> -> vector<16x133xf32>
    %104 = vector.broadcast %1 : vector<1x133xf32> to vector<16x133xf32>
    %105 = arith.addf %103, %104 : vector<16x133xf32>
    %106 = arith.addf %105, %60 : vector<16x133xf32>
    %cst_59 = arith.constant dense<0.000000e+00> : vector<16xf32>
    %107 = vector.multi_reduction <add>, %106, %cst_59 [1] : vector<16x133xf32> to vector<16xf32>
    %108 = vector.shape_cast %107 : vector<16xf32> to vector<16x1xf32>
    %cst_60 = arith.constant 1.330000e+02 : f32
    %109 = vector.broadcast %cst_60 : f32 to vector<16x1xf32>
    %110 = arith.divf %108, %109 : vector<16x1xf32>
    %111 = vector.broadcast %110 : vector<16x1xf32> to vector<16x133xf32>
    %112 = arith.subf %106, %111 : vector<16x133xf32>
    %113 = vector.broadcast %110 : vector<16x1xf32> to vector<16x133xf32>
    %114 = arith.subf %106, %113 : vector<16x133xf32>
    %115 = arith.mulf %112, %114 : vector<16x133xf32>
    %cst_61 = arith.constant dense<0.000000e+00> : vector<16xf32>
    %116 = vector.multi_reduction <add>, %115, %cst_61 [1] : vector<16x133xf32> to vector<16xf32>
    %117 = vector.shape_cast %116 : vector<16xf32> to vector<16x1xf32>
    %cst_62 = arith.constant 1.330000e+02 : f32
    %118 = vector.broadcast %cst_62 : f32 to vector<16x1xf32>
    %119 = arith.divf %117, %118 : vector<16x1xf32>
    %120 = vector.broadcast %110 : vector<16x1xf32> to vector<16x133xf32>
    %121 = arith.subf %106, %120 : vector<16x133xf32>
    %cst_63 = arith.constant 9.99999997E-7 : f32
    %122 = vector.broadcast %cst_63 : f32 to vector<16x1xf32>
    %123 = arith.addf %119, %122 : vector<16x1xf32>
    %124 = math.rsqrt %123 : vector<16x1xf32>
    %125 = vector.broadcast %124 : vector<16x1xf32> to vector<16x133xf32>
    %126 = arith.mulf %121, %125 : vector<16x133xf32>
    %127 = vector.broadcast %2 : vector<1x133xf32> to vector<16x133xf32>
    %128 = arith.mulf %126, %127 : vector<16x133xf32>
    %129 = vector.broadcast %3 : vector<1x133xf32> to vector<16x133xf32>
    %130 = arith.addf %128, %129 : vector<16x133xf32>
    %cst_64 = arith.constant dense<0.000000e+00> : vector<16x96xf32>
    %131 = tpu.matmul %130, %10, %cst_64 {dimension_numbers = #tpu.dot_dimension_numbers<[1], [0], [0], [1], [0, 0, 1, 1], [], []>} : vector<16x133xf32>, vector<133x96xf32>, vector<16x96xf32> -> vector<16x96xf32>
    %132 = vector.broadcast %12 : vector<1x96xf32> to vector<16x96xf32>
    %133 = arith.addf %131, %132 : vector<16x96xf32>
    %134 = vector.extract_strided_slice %133 {offsets = [0, 0], sizes = [8, 96], strides = [1, 1]} : vector<16x96xf32> to vector<8x96xf32>
    %135 = vector.extract_strided_slice %134 {offsets = [0, 0], sizes = [8, 32], strides = [1, 1]} : vector<8x96xf32> to vector<8x32xf32>
    %136 = vector.extract_strided_slice %134 {offsets = [0, 32], sizes = [8, 32], strides = [1, 1]} : vector<8x96xf32> to vector<8x32xf32>
    %137 = vector.extract_strided_slice %134 {offsets = [0, 64], sizes = [8, 32], strides = [1, 1]} : vector<8x96xf32> to vector<8x32xf32>
    %cst_65 = arith.constant dense<0.000000e+00> : vector<8x8xf32>
    %138 = tpu.matmul %135, %136, %cst_65 {dimension_numbers = #tpu.dot_dimension_numbers<[1], [1], [0], [0], [0, 0, 1, 0], [], []>} : vector<8x32xf32>, vector<8x32xf32>, vector<8x8xf32> -> vector<8x8xf32>
    %cst_66 = arith.constant 0.176776692 : f32
    %139 = vector.broadcast %cst_66 : f32 to vector<8x8xf32>
    %140 = arith.mulf %138, %139 : vector<8x8xf32>
    %cst_67 = arith.constant -1.000000e+09 : f32
    %141 = vector.broadcast %cst_67 : f32 to vector<8x8xf32>
    %142 = arith.select %41, %141, %140 : vector<8x8xi1>, vector<8x8xf32>
    %cst_68 = arith.constant dense<0xFF800000> : vector<8xf32>
    %143 = vector.multi_reduction <maximumf>, %142, %cst_68 [1] : vector<8x8xf32> to vector<8xf32>
    %144 = vector.shape_cast %143 : vector<8xf32> to vector<8x1xf32>
    %145 = vector.broadcast %144 : vector<8x1xf32> to vector<8x8xf32>
    %146 = arith.subf %142, %145 : vector<8x8xf32>
    %147 = math.exp %146 : vector<8x8xf32>
    %cst_69 = arith.constant dense<0.000000e+00> : vector<8xf32>
    %148 = vector.multi_reduction <add>, %147, %cst_69 [1] : vector<8x8xf32> to vector<8xf32>
    %149 = vector.shape_cast %148 : vector<8xf32> to vector<8x1xf32>
    %150 = vector.broadcast %149 : vector<8x1xf32> to vector<8x8xf32>
    %151 = arith.divf %147, %150 : vector<8x8xf32>
    %cst_70 = arith.constant dense<0.000000e+00> : vector<8x32xf32>
    %152 = tpu.matmul %151, %137, %cst_70 {dimension_numbers = #tpu.dot_dimension_numbers<[1], [0], [0], [1], [0, 0, 1, 1], [], []>} : vector<8x8xf32>, vector<8x32xf32>, vector<8x32xf32> -> vector<8x32xf32>
    %153 = vector.extract_strided_slice %133 {offsets = [8, 0], sizes = [8, 96], strides = [1, 1]} : vector<16x96xf32> to vector<8x96xf32>
    %154 = vector.extract_strided_slice %153 {offsets = [0, 0], sizes = [8, 32], strides = [1, 1]} : vector<8x96xf32> to vector<8x32xf32>
    %155 = vector.extract_strided_slice %153 {offsets = [0, 32], sizes = [8, 32], strides = [1, 1]} : vector<8x96xf32> to vector<8x32xf32>
    %156 = vector.extract_strided_slice %153 {offsets = [0, 64], sizes = [8, 32], strides = [1, 1]} : vector<8x96xf32> to vector<8x32xf32>
    %cst_71 = arith.constant dense<0.000000e+00> : vector<8x8xf32>
    %157 = tpu.matmul %154, %155, %cst_71 {dimension_numbers = #tpu.dot_dimension_numbers<[1], [1], [0], [0], [0, 0, 1, 0], [], []>} : vector<8x32xf32>, vector<8x32xf32>, vector<8x8xf32> -> vector<8x8xf32>
    %cst_72 = arith.constant 0.176776692 : f32
    %158 = vector.broadcast %cst_72 : f32 to vector<8x8xf32>
    %159 = arith.mulf %157, %158 : vector<8x8xf32>
    %cst_73 = arith.constant -1.000000e+09 : f32
    %160 = vector.broadcast %cst_73 : f32 to vector<8x8xf32>
    %161 = arith.select %59, %160, %159 : vector<8x8xi1>, vector<8x8xf32>
    %cst_74 = arith.constant dense<0xFF800000> : vector<8xf32>
    %162 = vector.multi_reduction <maximumf>, %161, %cst_74 [1] : vector<8x8xf32> to vector<8xf32>
    %163 = vector.shape_cast %162 : vector<8xf32> to vector<8x1xf32>
    %164 = vector.broadcast %163 : vector<8x1xf32> to vector<8x8xf32>
    %165 = arith.subf %161, %164 : vector<8x8xf32>
    %166 = math.exp %165 : vector<8x8xf32>
    %cst_75 = arith.constant dense<0.000000e+00> : vector<8xf32>
    %167 = vector.multi_reduction <add>, %166, %cst_75 [1] : vector<8x8xf32> to vector<8xf32>
    %168 = vector.shape_cast %167 : vector<8xf32> to vector<8x1xf32>
    %169 = vector.broadcast %168 : vector<8x1xf32> to vector<8x8xf32>
    %170 = arith.divf %166, %169 : vector<8x8xf32>
    %cst_76 = arith.constant dense<0.000000e+00> : vector<8x32xf32>
    %171 = tpu.matmul %170, %156, %cst_76 {dimension_numbers = #tpu.dot_dimension_numbers<[1], [0], [0], [1], [0, 0, 1, 1], [], []>} : vector<8x8xf32>, vector<8x32xf32>, vector<8x32xf32> -> vector<8x32xf32>
    %172 = tpu.concatenate %152, %171 in 0 : vector<8x32xf32>, vector<8x32xf32> -> vector<16x32xf32>
    %cst_77 = arith.constant dense<0.000000e+00> : vector<16x133xf32>
    %173 = tpu.matmul %172, %16, %cst_77 {dimension_numbers = #tpu.dot_dimension_numbers<[1], [0], [0], [1], [0, 0, 1, 1], [], []>} : vector<16x32xf32>, vector<32x133xf32>, vector<16x133xf32> -> vector<16x133xf32>
    %174 = vector.broadcast %4 : vector<1x133xf32> to vector<16x133xf32>
    %175 = arith.addf %173, %174 : vector<16x133xf32>
    %176 = arith.addf %175, %130 : vector<16x133xf32>
    %cst_78 = arith.constant dense<0.000000e+00> : vector<16xf32>
    %177 = vector.multi_reduction <add>, %176, %cst_78 [1] : vector<16x133xf32> to vector<16xf32>
    %178 = vector.shape_cast %177 : vector<16xf32> to vector<16x1xf32>
    %cst_79 = arith.constant 1.330000e+02 : f32
    %179 = vector.broadcast %cst_79 : f32 to vector<16x1xf32>
    %180 = arith.divf %178, %179 : vector<16x1xf32>
    %181 = vector.broadcast %180 : vector<16x1xf32> to vector<16x133xf32>
    %182 = arith.subf %176, %181 : vector<16x133xf32>
    %183 = vector.broadcast %180 : vector<16x1xf32> to vector<16x133xf32>
    %184 = arith.subf %176, %183 : vector<16x133xf32>
    %185 = arith.mulf %182, %184 : vector<16x133xf32>
    %cst_80 = arith.constant dense<0.000000e+00> : vector<16xf32>
    %186 = vector.multi_reduction <add>, %185, %cst_80 [1] : vector<16x133xf32> to vector<16xf32>
    %187 = vector.shape_cast %186 : vector<16xf32> to vector<16x1xf32>
    %cst_81 = arith.constant 1.330000e+02 : f32
    %188 = vector.broadcast %cst_81 : f32 to vector<16x1xf32>
    %189 = arith.divf %187, %188 : vector<16x1xf32>
    %190 = vector.broadcast %180 : vector<16x1xf32> to vector<16x133xf32>
    %191 = arith.subf %176, %190 : vector<16x133xf32>
    %cst_82 = arith.constant 9.99999997E-7 : f32
    %192 = vector.broadcast %cst_82 : f32 to vector<16x1xf32>
    %193 = arith.addf %189, %192 : vector<16x1xf32>
    %194 = math.rsqrt %193 : vector<16x1xf32>
    %195 = vector.broadcast %194 : vector<16x1xf32> to vector<16x133xf32>
    %196 = arith.mulf %191, %195 : vector<16x133xf32>
    %197 = vector.broadcast %5 : vector<1x133xf32> to vector<16x133xf32>
    %198 = arith.mulf %196, %197 : vector<16x133xf32>
    %199 = vector.broadcast %6 : vector<1x133xf32> to vector<16x133xf32>
    %200 = arith.addf %198, %199 : vector<16x133xf32>
    %201 = vector.extract_strided_slice %200 {offsets = [0, 0], sizes = [8, 133], strides = [1, 1]} : vector<16x133xf32> to vector<8x133xf32>
    %202 = vector.extract_strided_slice %26 {offsets = [0, 0], sizes = [1, 133], strides = [1, 1]} : vector<2x133xi32> to vector<1x133xi32>
    %203 = vector.broadcast %202 : vector<1x133xi32> to vector<8x133xi32>
    %204 = arith.cmpi eq, %21, %203 : vector<8x133xi32>
    %cst_83 = arith.constant 0.000000e+00 : f32
    %205 = vector.broadcast %cst_83 : f32 to vector<8x133xf32>
    %206 = arith.select %204, %201, %205 : vector<8x133xi1>, vector<8x133xf32>
    %cst_84 = arith.constant dense<0.000000e+00> : vector<133xf32>
    %207 = vector.multi_reduction <add>, %206, %cst_84 [0] : vector<8x133xf32> to vector<133xf32>
    %208 = vector.shape_cast %207 : vector<133xf32> to vector<1x133xf32>
    %209 = vector.extract_strided_slice %26 {offsets = [1, 0], sizes = [1, 133], strides = [1, 1]} : vector<2x133xi32> to vector<1x133xi32>
    %210 = vector.broadcast %209 : vector<1x133xi32> to vector<8x133xi32>
    %211 = arith.cmpi eq, %21, %210 : vector<8x133xi32>
    %cst_85 = arith.constant 0.000000e+00 : f32
    %212 = vector.broadcast %cst_85 : f32 to vector<8x133xf32>
    %213 = arith.select %211, %201, %212 : vector<8x133xi1>, vector<8x133xf32>
    %cst_86 = arith.constant dense<0.000000e+00> : vector<133xf32>
    %214 = vector.multi_reduction <add>, %213, %cst_86 [0] : vector<8x133xf32> to vector<133xf32>
    %215 = vector.shape_cast %214 : vector<133xf32> to vector<1x133xf32>
    %216 = vector.extract_strided_slice %200 {offsets = [8, 0], sizes = [8, 133], strides = [1, 1]} : vector<16x133xf32> to vector<8x133xf32>
    %217 = vector.extract_strided_slice %44 {offsets = [0, 0], sizes = [1, 133], strides = [1, 1]} : vector<2x133xi32> to vector<1x133xi32>
    %218 = vector.broadcast %217 : vector<1x133xi32> to vector<8x133xi32>
    %219 = arith.cmpi eq, %21, %218 : vector<8x133xi32>
    %cst_87 = arith.constant 0.000000e+00 : f32
    %220 = vector.broadcast %cst_87 : f32 to vector<8x133xf32>
    %221 = arith.select %219, %216, %220 : vector<8x133xi1>, vector<8x133xf32>
    %cst_88 = arith.constant dense<0.000000e+00> : vector<133xf32>
    %222 = vector.multi_reduction <add>, %221, %cst_88 [0] : vector<8x133xf32> to vector<133xf32>
    %223 = vector.shape_cast %222 : vector<133xf32> to vector<1x133xf32>
    %224 = vector.extract_strided_slice %44 {offsets = [1, 0], sizes = [1, 133], strides = [1, 1]} : vector<2x133xi32> to vector<1x133xi32>
    %225 = vector.broadcast %224 : vector<1x133xi32> to vector<8x133xi32>
    %226 = arith.cmpi eq, %21, %225 : vector<8x133xi32>
    %cst_89 = arith.constant 0.000000e+00 : f32
    %227 = vector.broadcast %cst_89 : f32 to vector<8x133xf32>
    %228 = arith.select %226, %216, %227 : vector<8x133xi1>, vector<8x133xf32>
    %cst_90 = arith.constant dense<0.000000e+00> : vector<133xf32>
    %229 = vector.multi_reduction <add>, %228, %cst_90 [0] : vector<8x133xf32> to vector<133xf32>
    %230 = vector.shape_cast %229 : vector<133xf32> to vector<1x133xf32>
    %231 = tpu.concatenate %208, %215, %223, %230 in 0 : vector<1x133xf32>, vector<1x133xf32>, vector<1x133xf32>, vector<1x133xf32> -> vector<4x133xf32>
    %cst_91 = arith.constant dense<0.000000e+00> : vector<4x128xf32>
    %232 = tpu.matmul %231, %17, %cst_91 {dimension_numbers = #tpu.dot_dimension_numbers<[1], [0], [0], [1], [0, 0, 1, 1], [], []>} : vector<4x133xf32>, vector<133x128xf32>, vector<4x128xf32> -> vector<4x128xf32>
    %233 = vector.broadcast %18 : vector<1x128xf32> to vector<4x128xf32>
    %234 = arith.addf %232, %233 : vector<4x128xf32>
    %235 = tpu.iota {dimensions = array<i32: 1>} : vector<4x128xi32>
    %c64_i32 = arith.constant 64 : i32
    %236 = vector.broadcast %c64_i32 : i32 to vector<4x128xi32>
    %237 = arith.cmpi slt, %235, %236 : vector<4x128xi32>
    %cst_92 = arith.constant 0.000000e+00 : f32
    %238 = vector.broadcast %cst_92 : f32 to vector<4x128xf32>
    %239 = arith.select %237, %234, %238 : vector<4x128xi1>, vector<4x128xf32>
    %cst_93 = arith.constant dense<0.000000e+00> : vector<4xf32>
    %240 = vector.multi_reduction <add>, %239, %cst_93 [1] : vector<4x128xf32> to vector<4xf32>
    %241 = vector.shape_cast %240 : vector<4xf32> to vector<4x1xf32>
    %cst_94 = arith.constant 1.562500e-02 : f32
    %242 = vector.broadcast %cst_94 : f32 to vector<4x1xf32>
    %243 = arith.mulf %241, %242 : vector<4x1xf32>
    %244 = vector.broadcast %243 : vector<4x1xf32> to vector<4x128xf32>
    %245 = arith.subf %234, %244 : vector<4x128xf32>
    %cst_95 = arith.constant 0.000000e+00 : f32
    %246 = vector.broadcast %cst_95 : f32 to vector<4x128xf32>
    %247 = arith.select %237, %245, %246 : vector<4x128xi1>, vector<4x128xf32>
    %248 = arith.mulf %247, %247 : vector<4x128xf32>
    %cst_96 = arith.constant dense<0.000000e+00> : vector<4xf32>
    %249 = vector.multi_reduction <add>, %248, %cst_96 [1] : vector<4x128xf32> to vector<4xf32>
    %250 = vector.shape_cast %249 : vector<4xf32> to vector<4x1xf32>
    %cst_97 = arith.constant 1.562500e-02 : f32
    %251 = vector.broadcast %cst_97 : f32 to vector<4x1xf32>
    %252 = arith.mulf %250, %251 : vector<4x1xf32>
    %253 = vector.broadcast %243 : vector<4x1xf32> to vector<4x128xf32>
    %254 = arith.subf %234, %253 : vector<4x128xf32>
    %cst_98 = arith.constant 9.99999974E-6 : f32
    %255 = vector.broadcast %cst_98 : f32 to vector<4x1xf32>
    %256 = arith.addf %252, %255 : vector<4x1xf32>
    %257 = math.rsqrt %256 : vector<4x1xf32>
    %258 = vector.broadcast %257 : vector<4x1xf32> to vector<4x128xf32>
    %259 = arith.mulf %254, %258 : vector<4x128xf32>
    %260 = vector.broadcast %19 : vector<1x128xf32> to vector<4x128xf32>
    %261 = arith.mulf %259, %260 : vector<4x128xf32>
    %262 = vector.broadcast %20 : vector<1x128xf32> to vector<4x128xf32>
    %263 = arith.addf %261, %262 : vector<4x128xf32>
    %264 = vector.extract_strided_slice %263 {offsets = [0, 0], sizes = [2, 128], strides = [1, 1]} : vector<4x128xf32> to vector<2x128xf32>
    %c0_99 = arith.constant 0 : index
    %c0_100 = arith.constant 0 : index
    %c0_101 = arith.constant 0 : index
    %265 = vector.load %arg9[%c0_99, %c0_100, %c0_101] : memref<2x2x128xf32, #tpu.memory_space<vmem>>, vector<1x2x128xf32>
    %266 = vector.shape_cast %265 : vector<1x2x128xf32> to vector<2x128xf32>
    %267 = vector.shape_cast %264 : vector<2x128xf32> to vector<1x2x128xf32>
    tpu.vector_store %arg9[%c0_99, %c0_100, %c0_101], %267 {strides = array<i32>} : memref<2x2x128xf32, #tpu.memory_space<vmem>>, vector<1x2x128xf32>,
    %268 = vector.extract_strided_slice %263 {offsets = [2, 0], sizes = [2, 128], strides = [1, 1]} : vector<4x128xf32> to vector<2x128xf32>
    %c1_102 = arith.constant 1 : index
    %c0_103 = arith.constant 0 : index
    %c0_104 = arith.constant 0 : index
    %269 = vector.load %arg9[%c1_102, %c0_103, %c0_104] : memref<2x2x128xf32, #tpu.memory_space<vmem>>, vector<1x2x128xf32>
    %270 = vector.shape_cast %269 : vector<1x2x128xf32> to vector<2x128xf32>
    %271 = vector.shape_cast %268 : vector<2x128xf32> to vector<1x2x128xf32>
    tpu.vector_store %arg9[%c1_102, %c0_103, %c0_104], %271 {strides = array<i32>} : memref<2x2x128xf32, #tpu.memory_space<vmem>>, vector<1x2x128xf32>,
    return
  }
  func.func @transform_0(%arg0: i32) -> (i32, i32) {
    %c0_i32 = arith.constant 0 : i32
    %c0_i32_0 = arith.constant 0 : i32
    return %arg0, %c0_i32 : i32, i32
  }
  func.func @transform_1(%arg0: i32) -> (i32, i32, i32) {
    %c0_i32 = arith.constant 0 : i32
    %c0_i32_0 = arith.constant 0 : i32
    %c0_i32_1 = arith.constant 0 : i32
    return %arg0, %c0_i32, %c0_i32_0 : i32, i32, i32
  }
  func.func @transform_2(%arg0: i32) -> (i32, i32, i32) {
    %c0_i32 = arith.constant 0 : i32
    %c0_i32_0 = arith.constant 0 : i32
    %c0_i32_1 = arith.constant 0 : i32
    %c0_i32_2 = arith.constant 0 : i32
    return %c0_i32, %c0_i32_0, %c0_i32_1 : i32, i32, i32
  }
  func.func @transform_3(%arg0: i32) -> (i32, i32) {
    %c0_i32 = arith.constant 0 : i32
    %c0_i32_0 = arith.constant 0 : i32
    %c0_i32_1 = arith.constant 0 : i32
    return %c0_i32, %c0_i32_0 : i32, i32
  }
  func.func @transform_4(%arg0: i32) -> (i32, i32, i32) {
    %c0_i32 = arith.constant 0 : i32
    %c0_i32_0 = arith.constant 0 : i32
    %c0_i32_1 = arith.constant 0 : i32
    %c0_i32_2 = arith.constant 0 : i32
    return %c0_i32, %c0_i32_0, %c0_i32_1 : i32, i32, i32
  }
  func.func @transform_5(%arg0: i32) -> (i32, i32) {
    %c0_i32 = arith.constant 0 : i32
    %c0_i32_0 = arith.constant 0 : i32
    %c0_i32_1 = arith.constant 0 : i32
    return %c0_i32, %c0_i32_0 : i32, i32
  }
  func.func @transform_6(%arg0: i32) -> (i32, i32) {
    %c0_i32 = arith.constant 0 : i32
    %c0_i32_0 = arith.constant 0 : i32
    %c0_i32_1 = arith.constant 0 : i32
    return %c0_i32, %c0_i32_0 : i32, i32
  }
  func.func @transform_7(%arg0: i32) -> (i32, i32) {
    %c0_i32 = arith.constant 0 : i32
    %c0_i32_0 = arith.constant 0 : i32
    %c0_i32_1 = arith.constant 0 : i32
    return %c0_i32, %c0_i32_0 : i32, i32
  }
  func.func @transform_8(%arg0: i32) -> (i32, i32, i32) {
    %c0_i32 = arith.constant 0 : i32
    %c0_i32_0 = arith.constant 0 : i32
    %c0_i32_1 = arith.constant 0 : i32
    return %arg0, %c0_i32, %c0_i32_0 : i32, i32, i32
  }
}

</mosaic_0001>

<bundles_post_ra>
// kernel: tpu_custom_call.1
= control target key start
LH: loop header
LB: loop body
LE: loop exit
PB: predicated region body
PF: predicated region fallthrough
CT: control target
= control target key end

     0   :  { %13 = vsyncpa [#allocation3], 0  ;;  %s3205_s0 = inlined_call_operand.vmem [shape: f32[32,133], index: 0, kind: input, shape index: {}]   ;;  %s3206_s1 = inlined_call_operand.vmem [shape: s32[4,2,133], index: 1, kind: input, shape index: {}]   ;;  %s3207_s2 = inlined_call_operand.vmem [shape: f32[2,133,96], index: 2, kind: input, shape index: {}]   ;;  %s3208_s3 = inlined_call_operand.vmem [shape: f32[2,96], index: 3, kind: input, shape index: {}]   ;;  %s3209_s4 = inlined_call_operand.vmem [shape: f32[2,32,133], index: 4, kind: input, shape index: {}]   ;;  %s3210_s5 = inlined_call_operand.vmem [shape: f32[7,133], index: 5, kind: input, shape index: {}]   ;;  %s3211_s6 = inlined_call_operand.vmem [shape: f32[133,128], index: 6, kind: input, shape index: {}]   ;;  %s3212_s7 = inlined_call_operand.vmem [shape: f32[3,128], index: 7, kind: input, shape index: {}]   ;;  %s3213_s8 = inlined_call_operand.hbm [shape: f32[4,2,128], index: 8, kind: output, shape index: {}]  }
   0x1   :  { %15 = vsyncpa [#allocation3 + $0x1], 0  ;;  %s2552_s27 = smov 0   ;;  %s2554_s28 = smov 0  }
   0x2   :  { %s2556_s29 = smov 0   ;;  %s2558_s30 = smov 0  }
   0x3 LB: > { %s2573_s9 = sadd.s32 4294967295, %s2496_s30   ;;  %s2124_s10 = sadd.s32 4294967294, %s2496_s30   ;;  %s2496_s30 = sphi %s2558_s30, %s3227_s30   ;;  %s2492_s29 = sphi %s2556_s29, %s3226_s29   ;;  %s2488_s28 = sphi %s2554_s28, %s3225_s28   ;;  %s2484_s27 = sphi %s2552_s27, %s3224_s27  }
   0x4   : > { %s2577_s11 = sadd.s32 1, %s2496_s30   ;;  %s206_s12 = sadd.s32 1, %s2492_s29 }
   0x5   : > { %s203_s13 = ssub.s32 %s2496_s30, %s2577_s11  ;;  %p216_p0 = scmp.ne.s32.totalorder %s2492_s29, %s2488_s28 }
   0x6   : > { %p204_p1 = scmp.eq.s32.totalorder %s203_s13, 0  ;;  %p217_p2 = scmp.eq.s32.totalorder %s2573_s9, 1 }
   0x7   : > { %p222_p3 = scmp.ne.s32.totalorder %s2488_s28, %s2484_s27  ;;  %p223_p4 = scmp.eq.s32.totalorder %s2124_s10, 1 }
   0x8   : > { %s2588_s14 = scalar_select %p204_p1, %s2492_s29, %s206_s12  }
   0x9   : > { %p2590_p5 = por %p217_p2, %p216_p0  ;;  %p2594_p6 = por %p223_p4, %p222_p3 }
   0xa   : > { %p2127_p7 = scmp.ge.s32.totalorder %s2496_s30, 1  ;;  %p279_p8 = scmp.lt.s32.totalorder %s2496_s30, 3 }
   0xc   : > { %p280_p9 = pnand %p2127_p7, %p279_p8 }
   0xd   : > { %s2129_s17 = sshll.u32 (!%p280_p9), %s2573_s9, 1  ;;  %v422_v0 = vlaneseq (!%p280_p9)  ;;  %v2498_v1 = vmov (!%p280_p9), 0.0   ;;  %v335_v3 = vld [vmem:[%s3210_s5] ss:$8 sm:$0x3] (!%p280_p9)  ;;  %vm484_vm9 = vcmask (!%p280_p9), 39936  }
   0xe   : > { %283 = sbr.rel (%p280_p9) target bundleno = 4417 (0x1141), region = 52  ;;  %p321_p10 = scmp.lt.s32.totalorder (!%p280_p9), %s2129_s17, 3  ;;  %2233 = vmatprep.subr.mxu1 (!%p280_p9), %v2498_v1  ;;  %v2499_v41 = vmov (!%p280_p9), 1.0   ;;  %v348_v43 = vld [vmem:[%s3207_s2] sm:$0xff] (!%p280_p9)  ;;  %v349_v44 = vld [vmem:[%s3207_s2 + $0x8] sm:$0xff] (!%p280_p9)  ;;  %v2500_v46 = vmov (!%p280_p9), 0.0|0.0  }
   0xf   : > { %v2603_v2 = vshrl.u32 (!%p280_p9), %v422_v0, 7  ;;  %v2274_v45 = vpack.c.bf16 (!%p280_p9), %v349_v44, %v348_v43  ;;  %v350_v47 = vld [vmem:[%s3207_s2 + $0x10] sm:$0xff] (!%p280_p9)  ;;  %v351_v48 = vld [vmem:[%s3207_s2 + $0x18] sm:$0xff] (!%p280_p9)  ;;  %v352_v50 = vld [vmem:[%s3207_s2 + $0x20] sm:$0xff] (!%p280_p9)  ;;  %s2502_s25 = smov (!%p280_p9), 64   ;;  %s2503_s26 = smov (!%p280_p9), 96  }
  0x10   : > { %v2277_v49 = vpack.c.bf16 (!%p280_p9), %v351_v48, %v350_v47  ;;  %v353_v51 = vld [vmem:[%s3207_s2 + $0x28] sm:$0xff] (!%p280_p9)  ;;  %v354_v53 = vld [vmem:[%s3207_s2 + $0x30] sm:$0xff] (!%p280_p9)  ;;  %v355_v54 = vld [vmem:[%s3207_s2 + $0x38] sm:$0xff] (!%p280_p9) }
  0x11   : > { %v2609_v4 = vsub.s32 (!%p280_p9), 0, %v2603_v2  ;;  %v2612_v5 = vsub.s32 (!%p280_p9), 1, %v2603_v2  ;;  %v444_v6 = vsub.s32 (!%p280_p9), 2, %v2603_v2  ;;  %v462_v7 = vsub.s32 (!%p280_p9), 3, %v2603_v2  ;;  %v356_v56 = vld [vmem:[%s3207_s2 + $0x40] sm:$0xff] (!%p280_p9)  ;;  %v357_v57 = vld [vmem:[%s3207_s2 + $0x48] sm:$0xff] (!%p280_p9) }
  0x12   : > { %v2280_v52 = vpack.c.bf16 (!%p280_p9), %v353_v51, %v352_v50  ;;  %v2283_v55 = vpack.c.bf16 (!%p280_p9), %v355_v54, %v354_v53  ;;  %v2286_v58 = vpack.c.bf16 (!%p280_p9), %v357_v57, %v356_v56  ;;  %v358_v59 = vld [vmem:[%s3207_s2 + $0x50] sm:$0xff] (!%p280_p9)  ;;  %v359_v60 = vld [vmem:[%s3207_s2 + $0x58] sm:$0xff] (!%p280_p9)  ;;  %v360_v62 = vld [vmem:[%s3207_s2 + $0x60] sm:$0xff] (!%p280_p9) }
  0x13   : > { %v432_v8 = vrot.slane (!%p280_p9), %v335_v3, %v2612_v5  ;;  %v428_v11 = vrot.slane (!%p280_p9), %v335_v3, %v2609_v4  ;;  %v2289_v61 = vpack.c.bf16 (!%p280_p9), %v359_v60, %v358_v59  ;;  %v361_v63 = vld [vmem:[%s3207_s2 + $0x68] sm:$0xff] (!%p280_p9)  ;;  %v388_v47 = vld [vmem:[%s3209_s4 + $0x18] sm:$0xff] (!%p280_p9)  ;;  %v385_v48 = vld [vmem:[%s3209_s4] sm:$0xff] (!%p280_p9) }
  0x14   : > { %v2292_v3 = vpack.c.bf16 (!%p280_p9), %v361_v63, %v360_v62  ;;  %v387_v50 = vld [vmem:[%s3209_s4 + $0x10] sm:$0xff] (!%p280_p9)  ;;  %v390_v51 = vld [vmem:[%s3209_s4 + $0x28] sm:$0xff] (!%p280_p9) }
  0x15   : > { %s3229_s17 = smov (!%p321_p10, %s2129_s17), 3  ;;  %v2299_v53 = vpack.c.bf16 %v387_v50, %v385_v48  ;;  %v391_v56 = vld [vmem:[%s3209_s4 + $0x30] sm:$0xff] }
  0x16   : > { %s2214_s20 = sshll.u32 %s3229_s17, 4  ;;  %s2215_s21 = sshll.u32 %s3229_s17, 2  ;;  %v2146_v50 = vld [vmem:[%s3207_s2 + $0xb0] sm:$0xff] }
  0x17   : > { %s332_s24 = scalar_lea.vmem %s3206_s1, %s2215_s21  ;;  %s2624_s10 = scalar_lea.vmem %s3205_s0, %s2214_s20 }
  0x18   : > { %v437_v9 = vld [vmem:[%s332_s24] sm:$0xf]  ;;  %v2172_v10 = vld [vmem:[%s332_s24 + $0x4] sm:$0xf]  ;;  %v436_v24 = vld [vmem:[%s2624_s10 + $0x8] sm:$0xff]  ;;  %s317_s21 = sand.u32 1, %s2488_s28  }
  0x19   : > { %v445_v12 = vrot.slane %v437_v9, %v444_v6  ;;  %v463_v13 = vrot.slane %v437_v9, %v462_v7  ;;  %v441_v14 = vrot.slane %v437_v9, %v2609_v4  ;;  %v459_v15 = vrot.slane %v437_v9, %v2612_v5  ;;  %v435_v31 = vld [vmem:[%s2624_s10] sm:$0xff]  ;;  %v560_v32 = vld [vmem:[%s2624_s10 + $0x18] sm:$0xff]  ;;  %v559_v36 = vld [vmem:[%s2624_s10 + $0x10] sm:$0xff]  ;;  %s2128_s22 = sshll.u32 %s317_s21, 2  ;;  %s2216_s10 = sshll.u32 %s2573_s9, 6 }
  0x1a   : > { %v570_v16 = vrot.slane %v2172_v10, %v444_v6  ;;  %v588_v17 = vrot.slane %v2172_v10, %v462_v7  ;;  %v566_v18 = vrot.slane %v2172_v10, %v2609_v4  ;;  %v584_v19 = vrot.slane %v2172_v10, %v2612_v5  ;;  %v362_v6 = vld [vmem:[%s3207_s2 + $0x70] sm:$0xff]  ;;  %v363_v7 = vld [vmem:[%s3207_s2 + $0x78] sm:$0xff]  ;;  %v364_v9 = vld [vmem:[%s3207_s2 + $0x80] sm:$0x1f]  ;;  %s319_s12 = scalar_lea.vmem [#allocation2], %s2128_s22  ;;  %s3164_s9 = scalar_lea.sflag [#allocation3], %s317_s21 }
  0x1b   : > { %v453_v20 = vrot.slane %v445_v12, %v2609_v4  ;;  %v471_v21 = vrot.slane %v463_v13, %v2612_v5  ;;  %v2633_v22 = vrot.slane %v441_v14, %v2609_v4  ;;  %v2636_v23 = vrot.slane %v459_v15, %v2612_v5  ;;  %v2179_v14 = vld [vmem:[%s3208_s3] ss:$0 sm:$0xff]  ;;  %s2050_s13 = sshll.u32 %s319_s12, 4  ;;  %s2504_s22 = smov [#allocation2]   ;;  %s3162_s13 = int_to_ptr.vmem [resolvable:$true] %s2050_s13 }
  0x1c   : > { %v578_v25 = vrot.slane %v570_v16, %v2609_v4  ;;  %v596_v26 = vrot.slane %v588_v17, %v2612_v5  ;;  %v2642_v27 = vrot.slane %v566_v18, %v2609_v4  ;;  %v2645_v28 = vrot.slane %v584_v19, %v2612_v5  ;;  %s2434_s20 = scalar_lea.vmem %s3162_s13, 64  ;;  %s2438_s23 = sshll.u32 %s2504_s22, 4  ;;  %s2439_s23 = int_to_ptr.vmem [resolvable:$false] %s2438_s23 }
  0x1d   : > { %vm2648_vm0 = vcmp.eq.s32.totalorder %v2603_v2, %v453_v20  ;;  %vm2653_vm1 = vcmp.eq.s32.totalorder %v2603_v2, %v471_v21  ;;  %vm454_vm2 = vcmp.eq.s32.totalorder %v2603_v2, %v2633_v22  ;;  %vm472_vm3 = vcmp.eq.s32.totalorder %v2603_v2, %v2636_v23  ;;  %p2435_p11 = scmp.ne.s32.totalorder %s3162_s13, %s2434_s20  ;;  %s2440_s24 = scalar_lea.vmem %s2439_s23, 128 }
  0x1e   : > { %vm475_vm4 = vmor %vm2648_vm0, %vm2653_vm1  ;;  %vm2668_vm5 = vcmp.eq.s32.totalorder %v2603_v2, %v578_v25  ;;  %vm2673_vm6 = vcmp.eq.s32.totalorder %v2603_v2, %v596_v26  ;;  %vm579_vm7 = vcmp.eq.s32.totalorder %v2603_v2, %v2642_v27  ;;  %vm597_vm8 = vcmp.eq.s32.totalorder %v2603_v2, %v2645_v28  ;;  %p2441_p0 = scmp.lt.s32.totalorder %s3162_s13, %s2439_s23  ;;  %p2442_p1 = scmp.lt.s32.totalorder %s2440_s24, %s2434_s20 }
  0x1f   : > { %v2681_v35 = vsel %vm475_vm4, %v432_v8, %v436_v24  ;;  %vm474_vm10 = vmor %vm454_vm2, %vm472_vm3  ;;  %p2436_p12 = pnand %p2435_p11, %p2590_p5 }
  0x20   : > { %vm479_vm11 = vcmp.ne.f32.partialorder %v2681_v35, 0.0  ;;  %v2691_v37 = vsel %vm474_vm10, %v428_v11, %v435_v31  ;;  %vm600_vm12 = vmor %vm2668_vm5, %vm2673_vm6  ;;  %vm693_vm10 = vcmask 1044480   ;;  %p2443_p2 = por %p2442_p1, %p2441_p0 }
  0x21   : > { %v2167_v38 = vsel %vm479_vm11, 1.0, %v2498_v1  ;;  %vm478_vm13 = vcmp.ne.f32.partialorder %v2691_v37, 0.0  ;;  %v2699_v39 = vsel %vm600_vm12, %v432_v8, %v560_v32  ;;  %vm599_vm14 = vmor %vm579_vm7, %vm597_vm8  ;;  %v2295_v8 = vpack.c.bf16 %v363_v7, %v362_v6  ;;  %p2437_p13 = pneg %p2436_p12 }
  0x22   : > { %2168 = vmatprep.subr.msk.mxu0 %vm484_vm9, %v2167_v38  ;;  %2170 = vmatprep.mubr.msk.f32.mxu0 %vm484_vm9, %v2167_v38  ;;  %vm604_vm15 = vcmp.ne.f32.partialorder %v2699_v39, 0.0  ;;  %v2710_v40 = vsel %vm599_vm14, %v428_v11, %v559_v36  ;;  %vm2501_vm11 = vmmov 0   ;;  %vm775_vm12 = vcmask 261120  }
  0x23   : > { %2169 = vmatpush1.xpose.msk.msra.mxu0 %vm478_vm13, %v2499_v41  ;;  %v2174_v42 = vsel %vm604_vm15, 1.0, %v2498_v1  ;;  %vm603_vm4 = vcmp.ne.f32.partialorder %v2710_v40, 0.0  ;;  %2235 = vmatprep.mubr.msk.f32.mxu1 %vm2501_vm11, %v2498_v1  ;;  %p2444_p3 = pnand %p2443_p2, %p2437_p13 }
  0x24   : > { %2175 = vmatprep.subr.msk.mxu0 %vm484_vm9, %v2174_v42 }
  0x26   : > { %2171 = vmatmul.mubr.msk.f32.vlgmr.msra.gmra.mrb[0].mxu0 %vm478_vm13, %v2499_v41  ;;  %vm852_vm13 = vcmask 64512  }
  0x27   : > { %2176 = vmatpush1.xpose.msk.msra.mxu0 %vm603_vm4, %v2499_v41  ;;  %2177 = vmatprep.mubr.msk.f32.mxu0 %vm484_vm9, %v2174_v42 }
  0x28   : > { %2273 = vmatprep.subr.bf16.mxu0 %v2500_v46 }
  0x2a   : > { %2178 = vmatmul.mubr.msk.f32.vlgmr.msra.gmra.mrb[2].mxu0 %vm603_vm4, %v2499_v41 }
  0x2b   : > { %2275 = vmatpush1.bf16.msra.mxu0 %v2274_v45  ;;  %2181 = vmatprep.mubr.msk.f32.mxu0 %vm484_vm9, %v2681_v35  ;;  %v386_v45 = vld [vmem:[%s3209_s4 + $0x8] sm:$0xff] }
  0x2c   : > { %2276 = vmatprep.subr.bf16.mxu0 %v2500_v46 }
  0x2f   : > { %2278 = vmatpush1.bf16.msra.mxu0 %v2277_v49  ;;  %v2297_v49 = vpack.c.bf16 %v388_v47, %v386_v45  ;;  %v2143_v45 = vld [vmem:[%s3207_s2 + $0x98] sm:$0xff]  ;;  %v2144_v47 = vld [vmem:[%s3207_s2 + $0xa0] sm:$0xff] }
  0x30   : > { %2279 = vmatprep.subr.bf16.mxu0 %v2500_v46  ;;  %v2309_v48 = vpack.c.bf16 %v2144_v47, %v2143_v45 }
  0x33   : > { %2281 = vmatpush1.bf16.msra.mxu0 %v2280_v52  ;;  %v392_v52 = vld [vmem:[%s3209_s4 + $0x38] sm:$0xff] }
  0x34   : > { %2282 = vmatprep.subr.bf16.mxu0 %v2500_v46  ;;  %v2301_v54 = vpack.c.bf16 %v392_v52, %v390_v51 }
  0x37   : > { %2284 = vmatpush1.bf16.msra.mxu0 %v2283_v55  ;;  %v389_v55 = vld [vmem:[%s3209_s4 + $0x20] sm:$0xff] }
  0x38   : > { %2285 = vmatprep.subr.bf16.mxu0 %v2500_v46  ;;  %v2303_v57 = vpack.c.bf16 %v391_v56, %v389_v55 }
  0x3b   : > { %2287 = vmatpush1.bf16.msra.mxu0 %v2286_v58 }
  0x3c   : > { %2288 = vmatprep.subr.bf16.mxu0 %v2500_v46 }
  0x3f   : > { %2290 = vmatpush1.bf16.msra.mxu0 %v2289_v61 }
  0x40   : > { %2291 = vmatprep.subr.bf16.mxu0 %v2500_v46 }
  0x43   : > { %2293 = vmatpush1.bf16.msra.mxu0 %v2292_v3 }
  0x44   : > { %2294 = vmatprep.subr.bf16.mxu0 %v2500_v46 }
  0x47   : > { %2296 = vmatpush1.bf16.msra.mxu0 %v2295_v8 }
  0x48   : > { %729 = vmatprep.subr.mxu0 %v2498_v1 }
  0x4b   : > { %2180 = vmatpush1.msk.msra.mxu0 %vm693_vm10, %v364_v9 }
  0x4c   : > { %762 = vmatmul.mubr.f32.vlgmr.msra.gmra.mrb[4].mxu0 %v2691_v37  ;;  %2298 = vmatprep.subr.bf16.mxu0 %v2297_v49  ;;  %v2145_v49 = vld [vmem:[%s3207_s2 + $0xa8] sm:$0xff] }
  0x4d   : > { %2182 = vmatprep.mubr.msk.f32.mxu0 %vm484_vm9, %v2699_v39  ;;  %2300 = vmatpush1.bf16.msra.mxu0 %v2299_v53  ;;  %v2312_v51 = vpack.c.bf16 %v2146_v50, %v2145_v49 }
  0x4e   : > { %2302 = vmatprep.subr.bf16.mxu0 %v2301_v54 }
  0x50   : > { %767 = vmatmul.mubr.f32.gmra.mrb[6].mxu0 %v2710_v40 }
  0x51   : > { %1187 = vmatprep.mubr.f32.mxu0 %v2498_v1  ;;  %2304 = vmatpush1.bf16.msra.mxu0 %v2303_v57 }
  0x52   : > { %2253 = vmatprep.subr.mxu0 %v2498_v1 }
  0xf9   : > { %v2784_v10 = vpop.f32.mrb[0].mxu0 }
  0xfa   : > { %v556_v11 = vpop.f32.mrb[1].mxu0  ;;  %vm558_vm14 = vcmp.eq.f32.partialorder %v2784_v10, 0.0 }
  0xfd   : > { %v2786_v12 = vpop.f32.mrb[2].mxu0 }
  0xfe   : > { %v680_v13 = vpop.f32.mrb[3].mxu0  ;;  %vm682_vm15 = vcmp.eq.f32.partialorder %v2786_v12, 0.0  ;;  %v2159_v12 = vld [vmem:[%s3209_s4 + $0x48] sm:$0xff] }
 0x11f   : > { %v763_v15 = vpop.f32.mrb[4].mxu0 }
 0x120   : > { %v764_v16 = vadd.f32 %v2179_v14, %v763_v15  ;;  %v765_v17 = vpop.f32.mrb[5].mxu0 }
 0x121   : > { %v2135_v17 = vld [vmem:[%s3210_s5 + $0x1] ss:$8 sm:$0x3] }
 0x122   : > { %864 = vrot.lane.b32.xlu1 %v764_v16, %s2502_s25  ;;  %773 = vrot.lane.b32.xlu0 %v764_v16, %s2503_s26 }
 0x123   : > { %v768_v31 = vpop.f32.mrb[6].mxu0 }
 0x124   : > { %v770_v32 = vpop.f32.mrb[7].mxu0  ;;  %v769_v44 = vadd.f32 %v2179_v14, %v768_v31 }
 0x194   : > { %v774_v18 = vpop.permute.xlu0 %773  ;;  %v865_v19 = vpop.permute.xlu1 %864 }
 0x195   : > { %2234 = vmatpush3.xpose.msk.msra.mxu1 %vm775_vm12, %v774_v18  ;;  %v2852_v18 = vrot.slane %v2135_v17, %v2609_v4 }
 0x196   : > { %2238 = vmatprep.subr.mxu1 %v2498_v1 }
 0x198   : > { %2236 = vmatmul.mubr.msk.f32.vlgmr.msra.gmra.mrb[0].mxu1 %vm775_vm12, %v764_v16 }
 0x199   : > { %2239 = vmatpush3.msra.mxu1 %v865_v19  ;;  %2240 = vmatprep.mubr.msk.f32.mxu1 %vm2501_vm11, %v2498_v1  ;;  %v2855_v19 = vrot.slane %v2135_v17, %v2612_v5 }
 0x19a   : > { %2243 = vmatprep.subr.mxu1 %v2498_v1 }
 0x26b   : > { %v846_v20 = vpop.f32.mrb[0].mxu1 }
 0x26c   : > { %v850_v21 = vmul.f32 0.17677669, %v846_v20  ;;  %v2237_v24 = vpop.f32.mrb[1].mxu1 }
 0x26e   : > { %v851_v25 = vsel %vm558_vm14, -1e+09, %v850_v21 }
 0x26f   : > { %v853_v26 = vsel %vm852_vm13, %v851_v25, -inf }
 0x270   : > { %854 = vmax.xlane.f32.xlu0 %v853_v26 }
 0x2fd   : > { %v855_v36 = vpop.xlane.xlu0 %854 }
 0x2fe   : > { %v856_v38 = vsub.f32 %v851_v25, %v855_v36 }
 0x300   : > { %v857_v41 = vmul.f32 1.442695, %v856_v38 }
 0x302   : > { %2408 = vpow2.f32 %v857_v41 }
 0x30c   : > { %v2409_v42 = vpop.eup %2408 }
 0x30d   : > { %v859_v43 = vsel %vm852_vm13, %v2409_v42, 0.0 }
 0x30e   : > { %860 = vadd.xlane.f32.xlu1 %v859_v43 }
 0x31f   : > { %941 = vrot.lane.b32.xlu1 %v769_v44, %s2503_s26 }
 0x39b   : > { %v861_v58 = vpop.xlane.xlu1 %860 }
 0x39c   : > { %2410 = vrcp.f32 %v861_v58 }
 0x39f   : > { %v942_v61 = vpop.permute.xlu1 %941 }
 0x3a6   : > { %v2411_v59 = vpop.eup %2410 }
 0x3a7   : > { %v863_v60 = vmul.f32 %v2411_v59, %v2409_v42  ;;  %v2141_v42 = vld [vmem:[%s3207_s2 + $0x88] sm:$0xff] }
 0x3a9   : > { %2241 = vmatmul.mubr.msk.f32.vlgmr.msra.gmra.mrb[2].mxu1 %vm852_vm13, %v863_v60  ;;  %v2147_v60 = vld [vmem:[%s3207_s2 + $0xb8] sm:$0xff] }
 0x3aa   : > { %2244 = vmatpush3.xpose.msk.msra.mxu1 %vm775_vm12, %v942_v61  ;;  %2245 = vmatprep.mubr.msk.f32.mxu1 %vm2501_vm11, %v2498_v1  ;;  %v2148_v61 = vld [vmem:[%s3207_s2 + $0xc0] sm:$0xff] }
 0x3ab   : > { %2248 = vmatprep.subr.mxu1 %v2498_v1 }
 0x3ad   : > { %2246 = vmatmul.mubr.msk.f32.vlgmr.msra.gmra.mrb[4].mxu1 %vm775_vm12, %v769_v44 }
 0x3ae   : > { %2250 = vmatprep.mubr.msk.f32.mxu1 %vm2501_vm11, %v2498_v1 }
 0x47c   : > { %v936_v62 = vpop.f32.mrb[2].mxu1 }
 0x47d   : > { %v2242_v63 = vpop.f32.mrb[3].mxu1  ;;  %2189 = vmatmul.mubr.msk.f32.vlgmr.msra.gmra.mrb[8].mxu0 %vm775_vm12, %v936_v62  ;;  %v2315_v62 = vpack.c.bf16 %v2148_v61, %v2147_v60 }
 0x47e   : > { %1193 = vmatprep.mubr.f32.mxu0 %v2498_v1  ;;  %v2149_v63 = vld [vmem:[%s3207_s2 + $0xc8] sm:$0xff] }
 0x480   : > { %v1013_v3 = vpop.f32.mrb[4].mxu1 }
 0x481   : > { %v1017_v6 = vmul.f32 0.17677669, %v1013_v3  ;;  %v2247_v7 = vpop.f32.mrb[5].mxu1  ;;  %v2150_v3 = vld [vmem:[%s3207_s2 + $0xd0] sm:$0xff] }
 0x482   : > { %v2151_v7 = vld [vmem:[%s3207_s2 + $0xd8] sm:$0xff] }
 0x483   : > { %v1018_v8 = vsel %vm682_vm15, -1e+09, %v1017_v6  ;;  %v2318_v6 = vpack.c.bf16 %v2150_v3, %v2149_v63 }
 0x484   : > { %v1019_v9 = vsel %vm852_vm13, %v1018_v8, -inf }
 0x485   : > { %1020 = vmax.xlane.f32.xlu1 %v1019_v9 }
 0x512   : > { %v1021_v11 = vpop.xlane.xlu1 %1020 }
 0x513   : > { %v1022_v13 = vsub.f32 %v1018_v8, %v1021_v11  ;;  %v2152_v8 = vld [vmem:[%s3207_s2 + $0xe0] sm:$0xff]  ;;  %v2153_v11 = vld [vmem:[%s3207_s2 + $0xe8] sm:$0xff] }
 0x514   : > { %v2321_v9 = vpack.c.bf16 %v2152_v8, %v2151_v7 }
 0x515   : > { %v1023_v14 = vmul.f32 1.442695, %v1022_v13  ;;  %v2154_v13 = vld [vmem:[%s3207_s2 + $0xf0] sm:$0xff] }
 0x517   : > { %2412 = vpow2.f32 %v1023_v14  ;;  %v2324_v14 = vpack.c.bf16 %v2154_v13, %v2153_v11 }
 0x521   : > { %v2413_v15 = vpop.eup %2412 }
 0x522   : > { %v1025_v16 = vsel %vm852_vm13, %v2413_v15, 0.0 }
 0x523   : > { %1026 = vadd.xlane.f32.xlu0 %v1025_v16  ;;  %v2156_v16 = vld [vmem:[%s3207_s2 + $0x100] sm:$0xff] }
 0x539   : > { %1030 = vrot.lane.b32.xlu0 %v769_v44, %s2502_s25 }
 0x550   : > { %v1189_v20 = vpop.f32.mrb[8].mxu0 }
 0x551   : > { %v1190_v21 = vadd.f32 %v1189_v20, %v2852_v18  ;;  %v1191_v24 = vpop.f32.mrb[9].mxu0  ;;  %v2157_v20 = vld [vmem:[%s3207_s2 + $0x108] sm:$0x1f] }
 0x552   : > { %v1192_v25 = vadd.f32 %v1191_v24, %v2855_v19 }
 0x553   : > { %v1200_v31 = vadd.f32 %v1190_v21, %v2691_v37 }
 0x554   : > { %v1201_v26 = vadd.f32 %v1192_v25, %v2681_v35  ;;  %v2142_v35 = vld [vmem:[%s3207_s2 + $0x90] sm:$0xff] }
 0x555   : > { %v2306_v37 = vpack.c.bf16 %v2142_v35, %v2141_v42 }
 0x556   : > { %v1204_v32 = vsel %vm484_vm9, %v1201_v26, 0.0 }
 0x557   : > { %v1205_v36 = vadd.f32 %v1204_v32, %v1200_v31 }
 0x559   : > { %1206 = vadd.xlane.f32.xlu0 %v1205_v36 }
 0x5b0   : > { %v1027_v38 = vpop.xlane.xlu0 %1026 }
 0x5b1   : > { %2414 = vrcp.f32 %v1027_v38 }
 0x5b4   : > { %v1031_v41 = vpop.permute.xlu0 %1030 }
 0x5b5   : > { %2249 = vmatpush3.msra.mxu1 %v1031_v41 }
 0x5b6   : > { %2305 = vmatprep.subr.bf16.mxu1 %v2500_v46 }
 0x5bb   : > { %v2415_v43 = vpop.eup %2414 }
 0x5bc   : > { %v1029_v44 = vmul.f32 %v2415_v43, %v2413_v15  ;;  %v2155_v15 = vld [vmem:[%s3207_s2 + $0xf8] sm:$0xff] }
 0x5bd   : > { %v2327_v17 = vpack.c.bf16 %v2156_v16, %v2155_v15 }
 0x5be   : > { %2251 = vmatmul.mubr.msk.f32.vlgmr.msra.gmra.mrb[6].mxu1 %vm852_vm13, %v1029_v44 }
 0x5bf   : > { %2307 = vmatpush1.bf16.msra.mxu1 %v2306_v37 }
 0x5c0   : > { %2308 = vmatprep.subr.bf16.mxu1 %v2500_v46 }
 0x5c3   : > { %2310 = vmatpush1.bf16.msra.mxu1 %v2309_v48 }
 0x5c4   : > { %2311 = vmatprep.subr.bf16.mxu1 %v2500_v46 }
 0x5c7   : > { %2313 = vmatpush1.bf16.msra.mxu1 %v2312_v51  ;;  %v2191_v51 = vld [vmem:[%s3208_s3 + $0x1] ss:$0 sm:$0xff] }
 0x5c8   : > { %2314 = vmatprep.subr.bf16.mxu1 %v2500_v46 }
 0x5cb   : > { %2316 = vmatpush1.bf16.msra.mxu1 %v2315_v62 }
 0x5cc   : > { %2317 = vmatprep.subr.bf16.mxu1 %v2500_v46 }
 0x5cf   : > { %2319 = vmatpush1.bf16.msra.mxu1 %v2318_v6 }
 0x5d0   : > { %2320 = vmatprep.subr.bf16.mxu1 %v2500_v46 }
 0x5d3   : > { %2322 = vmatpush1.bf16.msra.mxu1 %v2321_v9 }
 0x5d4   : > { %2323 = vmatprep.subr.bf16.mxu1 %v2500_v46 }
 0x5d7   : > { %2325 = vmatpush1.bf16.msra.mxu1 %v2324_v14 }
 0x5d8   : > { %2326 = vmatprep.subr.bf16.mxu1 %v2500_v46 }
 0x5db   : > { %2328 = vmatpush1.bf16.msra.mxu1 %v2327_v17 }
 0x5dc   : > { %1316 = vmatprep.subr.mxu1 %v2498_v1 }
 0x5df   : > { %2192 = vmatpush1.msk.msra.mxu1 %vm693_vm10, %v2157_v20 }
 0x5e0   : > { %2337 = vmatprep.subr.bf16.mxu1 %v2500_v46 }
 0x5e6   : > { %v1207_v52 = vpop.xlane.xlu0 %1206 }
 0x5e7   : > { %v1213_v53 = vmul.f32 0.007518797, %v1207_v52 }
 0x5e9   : > { %v1215_v54 = vsub.f32 %v1200_v31, %v1213_v53  ;;  %v1216_v55 = vsub.f32 %v1201_v26, %v1213_v53  ;;  %v2136_v26 = vld [vmem:[%s3210_s5 + $0x2] ss:$8 sm:$0x3]  ;;  %v2137_v31 = vld [vmem:[%s3210_s5 + $0x3] ss:$8 sm:$0x3] }
 0x5ea   : > { %v1249_v32 = vrot.slane %v2136_v26, %v2612_v5  ;;  %v1245_v36 = vrot.slane %v2136_v26, %v2609_v4  ;;  %v1264_v42 = vrot.slane %v2137_v31, %v2612_v5  ;;  %v1260_v43 = vrot.slane %v2137_v31, %v2609_v4 }
 0x5eb   : > { %v1219_v56 = vmul.f32 %v1215_v54, %v1215_v54  ;;  %v1220_v57 = vmul.f32 %v1216_v55, %v1216_v55 }
 0x5ed   : > { %v1223_v58 = vsel %vm484_vm9, %v1220_v57, 0.0 }
 0x5ee   : > { %v1224_v59 = vadd.f32 %v1223_v58, %v1219_v56 }
 0x5f0   : > { %1225 = vadd.xlane.f32.xlu1 %v1224_v59 }
 0x67d   : > { %v1226_v21 = vpop.xlane.xlu1 %1225 }
 0x67e   : > { %v1231_v24 = vmul.f32 0.007518797, %v1226_v21 }
 0x680   : > { %v1233_v25 = vadd.f32 1e-06, %v1231_v24 }
 0x682   : > { %2416 = vrsqrt.f32 %v1233_v25 }
 0x68c   : > { %v2417_v38 = vpop.eup %2416 }
 0x68d   : > { %v1238_v41 = vmul.f32 %v2417_v38, %v1216_v55  ;;  %v1237_v35 = vmul.f32 %v2417_v38, %v1215_v54 }
 0x68f   : > { %v1253_v37 = vmul.f32 %v1249_v32, %v1238_v41  ;;  %v1252_v44 = vmul.f32 %v1245_v36, %v1237_v35 }
 0x691   : > { %v1102_v45 = vpop.f32.mrb[6].mxu1  ;;  %v2936_v47 = vadd.f32 %v1264_v42, %v1253_v37  ;;  %v2938_v48 = vadd.f32 %v1260_v43, %v1252_v44 }
 0x692   : > { %v2252_v49 = vpop.f32.mrb[7].mxu1  ;;  %2190 = vmatmul.mubr.msk.f32.gmra.mrb[10].mxu0 %vm775_vm12, %v1102_v45 }
 0x693   : > { %2193 = vmatprep.mubr.msk.f32.mxu1 %vm484_vm9, %v2936_v47  ;;  %2255 = vmatprep.mubr.msk.f32.mxu0 %vm2501_vm11, %v2498_v1 }
 0x694   : > { %1349 = vmatmul.mubr.f32.vlgmr.msra.gmra.mrb[8].mxu1 %v2938_v48 }
 0x765   : > { %v1195_v50 = vpop.f32.mrb[10].mxu0 }
 0x766   : > { %v1197_v52 = vpop.f32.mrb[11].mxu0  ;;  %v1196_v58 = vadd.f32 %v1195_v50, %v2852_v18 }
 0x767   : > { %v1350_v53 = vpop.f32.mrb[8].mxu1  ;;  %v1198_v56 = vadd.f32 %v1197_v52, %v2855_v19 }
 0x768   : > { %v1351_v54 = vadd.f32 %v2191_v51, %v1350_v53  ;;  %v1352_v55 = vpop.f32.mrb[9].mxu1  ;;  %v1202_v60 = vadd.f32 %v1196_v58, %v2710_v40 }
 0x769   : > { %v1203_v57 = vadd.f32 %v1198_v56, %v2699_v39 }
 0x76a   : > { %1360 = vrot.lane.b32.xlu1 %v1351_v54, %s2503_s26 }
 0x76b   : > { %v1208_v59 = vsel %vm484_vm9, %v1203_v57, 0.0 }
 0x76c   : > { %v1209_v61 = vadd.f32 %v1208_v59, %v1202_v60 }
 0x78e   : > { %1210 = vadd.xlane.f32.xlu1 %v1209_v61 }
 0x7dc   : > { %v1361_v62 = vpop.permute.xlu1 %1360 }
 0x7dd   : > { %2254 = vmatpush3.xpose.msk.msra.mxu0 %vm775_vm12, %v1361_v62 }
 0x7de   : > { %2258 = vmatprep.subr.mxu0 %v2498_v1 }
 0x7e0   : > { %2256 = vmatmul.mubr.msk.f32.vlgmr.msra.gmra.mrb[12].mxu0 %vm775_vm12, %v1351_v54 }
 0x7e1   : > { %2260 = vmatprep.mubr.msk.f32.mxu0 %vm2501_vm11, %v2498_v1 }
 0x81b   : > { %v1211_v19 = vpop.xlane.xlu1 %1210 }
 0x81c   : > { %v1214_v39 = vmul.f32 0.007518797, %v1211_v19 }
 0x81e   : > { %v1217_v63 = vsub.f32 %v1202_v60, %v1214_v39  ;;  %v1218_v18 = vsub.f32 %v1203_v57, %v1214_v39 }
 0x820   : > { %v1221_v3 = vmul.f32 %v1217_v63, %v1217_v63  ;;  %v1222_v6 = vmul.f32 %v1218_v18, %v1218_v18 }
 0x822   : > { %v1227_v40 = vsel %vm484_vm9, %v1222_v6, 0.0  ;;  %v2158_v6 = vld [vmem:[%s3209_s4 + $0x40] sm:$0xff] }
 0x823   : > { %v1228_v7 = vadd.f32 %v1227_v40, %v1221_v3  ;;  %v2160_v40 = vld [vmem:[%s3209_s4 + $0x50] sm:$0xff] }
 0x825   : > { %1229 = vadd.xlane.f32.xlu0 %v1228_v7  ;;  %v2163_v7 = vld [vmem:[%s3209_s4 + $0x68] sm:$0xff] }
 0x8b2   : > { %v1230_v8 = vpop.xlane.xlu0 %1229 }
 0x8b3   : > { %v1232_v9 = vmul.f32 0.007518797, %v1230_v8  ;;  %v1432_v11 = vpop.f32.mrb[12].mxu0  ;;  %v2165_v8 = vld [vmem:[%s3209_s4 + $0x78] sm:$0xff] }
 0x8b4   : > { %v1436_v13 = vmul.f32 0.17677669, %v1432_v11  ;;  %v2257_v14 = vpop.f32.mrb[13].mxu0  ;;  %v2331_v11 = vpack.c.bf16 %v2160_v40, %v2158_v6  ;;  %v404_v40 = vld [vmem:[%s3211_s6 + $0x10] sm:$0xff] }
 0x8b5   : > { %v1234_v15 = vadd.f32 1e-06, %v1232_v9  ;;  %v2333_v14 = vpack.c.bf16 %v2165_v8, %v2163_v7  ;;  %v405_v7 = vld [vmem:[%s3211_s6 + $0x18] sm:$0xff] }
 0x8b6   : > { %v1437_v16 = vsel %vm558_vm14, -1e+09, %v1436_v13  ;;  %v2341_v8 = vpack.c.bf16 %v405_v7, %v404_v40 }
 0x8b7   : > { %2418 = vrsqrt.f32 %v1234_v15  ;;  %v1438_v17 = vsel %vm852_vm13, %v1437_v16, -inf  ;;  %v2162_v15 = vld [vmem:[%s3209_s4 + $0x60] sm:$0xff] }
 0x8b8   : > { %1439 = vmax.xlane.f32.xlu0 %v1438_v17 }
 0x8c1   : > { %v2419_v20 = vpop.eup %2418 }
 0x8c2   : > { %v1240_v21 = vmul.f32 %v2419_v20, %v1218_v18  ;;  %v1239_v24 = vmul.f32 %v2419_v20, %v1217_v63  ;;  %v2161_v63 = vld [vmem:[%s3209_s4 + $0x58] sm:$0xff] }
 0x8c3   : > { %v2329_v18 = vpack.c.bf16 %v2161_v63, %v2159_v12 }
 0x8c4   : > { %v1255_v25 = vmul.f32 %v1249_v32, %v1240_v21  ;;  %v1254_v26 = vmul.f32 %v1245_v36, %v1239_v24  ;;  %v2138_v24 = vld [vmem:[%s3210_s5 + $0x4] ss:$8 sm:$0x3] }
 0x8c6   : > { %v2964_v31 = vadd.f32 %v1264_v42, %v1255_v25  ;;  %v2966_v38 = vadd.f32 %v1260_v43, %v1254_v26  ;;  %v1695_v25 = vrot.slane %v2138_v24, %v2609_v4  ;;  %v1699_v26 = vrot.slane %v2138_v24, %v2612_v5 }
 0x8c8   : > { %2194 = vmatprep.mubr.msk.f32.mxu1 %vm484_vm9, %v2964_v31 }
 0x8c9   : > { %1354 = vmatmul.mubr.f32.gmra.mrb[10].mxu1 %v2966_v38 }
 0x945   : > { %v1440_v10 = vpop.xlane.xlu0 %1439 }
 0x946   : > { %v1441_v41 = vsub.f32 %v1437_v16, %v1440_v10  ;;  %v2164_v16 = vld [vmem:[%s3209_s4 + $0x70] sm:$0xff] }
 0x947   : > { %v2335_v17 = vpack.c.bf16 %v2164_v16, %v2162_v15  ;;  %v409_v15 = vld [vmem:[%s3211_s6 + $0x38] sm:$0xff] }
 0x948   : > { %v1442_v35 = vmul.f32 1.442695, %v1441_v41 }
 0x94a   : > { %2420 = vpow2.f32 %v1442_v35 }
 0x954   : > { %v2421_v37 = vpop.eup %2420 }
 0x955   : > { %v1444_v44 = vsel %vm852_vm13, %v2421_v37, 0.0 }
 0x956   : > { %1445 = vadd.xlane.f32.xlu0 %v1444_v44 }
 0x96c   : > { %1449 = vrot.lane.b32.xlu0 %v1351_v54, %s2502_s25 }
 0x99c   : > { %v1355_v32 = vpop.f32.mrb[10].mxu1 }
 0x99d   : > { %v1356_v36 = vadd.f32 %v2191_v51, %v1355_v32  ;;  %v1357_v42 = vpop.f32.mrb[11].mxu1 }
 0x99f   : > { %1526 = vrot.lane.b32.xlu1 %v1356_v36, %s2503_s26 }
 0x9e3   : > { %v1446_v43 = vpop.xlane.xlu0 %1445 }
 0x9e4   : > { %2422 = vrcp.f32 %v1446_v43 }
 0x9e7   : > { %v1450_v45 = vpop.permute.xlu0 %1449 }
 0x9e8   : > { %2259 = vmatpush3.msra.mxu0 %v1450_v45 }
 0x9e9   : > { %2263 = vmatprep.subr.mxu0 %v2498_v1 }
 0x9ee   : > { %v2423_v49 = vpop.eup %2422 }
 0x9ef   : > { %v1448_v50 = vmul.f32 %v2423_v49, %v2421_v37 }
 0x9f1   : > { %2261 = vmatmul.mubr.msk.f32.vlgmr.msra.gmra.mrb[14].mxu0 %vm852_vm13, %v1448_v50 }
 0x9f2   : > { %2265 = vmatprep.mubr.msk.f32.mxu0 %vm2501_vm11, %v2498_v1 }
 0xa11   : > { %v1527_v52 = vpop.permute.xlu1 %1526 }
 0xa12   : > { %2264 = vmatpush3.xpose.msk.msra.mxu0 %vm775_vm12, %v1527_v52 }
 0xa13   : > { %2268 = vmatprep.subr.mxu0 %v2498_v1 }
 0xa15   : > { %2266 = vmatmul.mubr.msk.f32.vlgmr.msra.gmra.mrb[16].mxu0 %vm775_vm12, %v1356_v36 }
 0xa16   : > { %2270 = vmatprep.mubr.msk.f32.mxu0 %vm2501_vm11, %v2498_v1 }
 0xac4   : > { %v1521_v51 = vpop.f32.mrb[14].mxu0 }
 0xac5   : > { %v2262_v53 = vpop.f32.mrb[15].mxu0 }
 0xae8   : > { %v1598_v54 = vpop.f32.mrb[16].mxu0 }
 0xae9   : > { %v1602_v55 = vmul.f32 0.17677669, %v1598_v54  ;;  %v2267_v56 = vpop.f32.mrb[17].mxu0 }
 0xaeb   : > { %v1603_v57 = vsel %vm682_vm15, -1e+09, %v1602_v55 }
 0xaec   : > { %v1604_v58 = vsel %vm852_vm13, %v1603_v57, -inf }
 0xaed   : > { %1605 = vmax.xlane.f32.xlu0 %v1604_v58 }
 0xb03   : > { %1615 = vrot.lane.b32.xlu0 %v1356_v36, %s2502_s25  ;;  %s3160_s25 = scalar_lea.hbm %s3213_s8, %s2216_s10 }
 0xb7a   : > { %v1606_v59 = vpop.xlane.xlu0 %1605 }
 0xb7b   : > { %v1607_v60 = vsub.f32 %v1603_v57, %v1606_v59 }
 0xb7d   : > { %v1608_v61 = vmul.f32 1.442695, %v1607_v60 }
 0xb7e   : > { %v1616_v62 = vpop.permute.xlu0 %1615 }
 0xb7f   : > { %2424 = vpow2.f32 %v1608_v61  ;;  %2269 = vmatpush3.msra.mxu0 %v1616_v62 }
 0xb80   : > { %2330 = vmatprep.subr.bf16.mxu0 %v2329_v18 }
 0xb89   : > { %v2425_v19 = vpop.eup %2424 }
 0xb8a   : > { %v1610_v39 = vsel %vm852_vm13, %v2425_v19, 0.0 }
 0xb8b   : > { %1611 = vadd.xlane.f32.xlu1 %v1610_v39 }
 0xc18   : > { %v1612_v3 = vpop.xlane.xlu1 %1611 }
 0xc19   : > { %2426 = vrcp.f32 %v1612_v3  ;;  %v403_v3 = vld [vmem:[%s3211_s6 + $0x8] sm:$0xff] }
 0xc23   : > { %v2427_v9 = vpop.eup %2426 }
 0xc24   : > { %v1614_v13 = vmul.f32 %v2427_v9, %v2425_v19  ;;  %v406_v9 = vld [vmem:[%s3211_s6 + $0x20] sm:$0xff] }
 0xc26   : > { %2271 = vmatmul.mubr.msk.f32.vlgmr.msra.gmra.mrb[18].mxu0 %vm852_vm13, %v1614_v13 }
 0xc27   : > { %2332 = vmatpush1.bf16.msra.mxu0 %v2331_v11  ;;  %1772 = vmatprep.mubr.f32.mxu0 %v2498_v1  ;;  %v407_v11 = vld [vmem:[%s3211_s6 + $0x28] sm:$0xff] }
 0xc28   : > { %2334 = vmatprep.subr.bf16.mxu0 %v2333_v14  ;;  %v2344_v13 = vpack.c.bf16 %v407_v11, %v406_v9  ;;  %v408_v14 = vld [vmem:[%s3211_s6 + $0x30] sm:$0xff] }
 0xc29   : > { %v2347_v16 = vpack.c.bf16 %v409_v15, %v408_v14 }
 0xc2b   : > { %2336 = vmatpush1.bf16.msra.mxu0 %v2335_v17  ;;  %v410_v17 = vld [vmem:[%s3211_s6 + $0x40] sm:$0xff] }
 0xc2e   : > { %2201 = vmatmul.mubr.msk.f32.vlgmr.msra.gmra.mrb[20].mxu0 %vm775_vm12, %v1521_v51 }
 0xc2f   : > { %1778 = vmatprep.mubr.f32.mxu0 %v2498_v1 }
 0xcf9   : > { %v1687_v20 = vpop.f32.mrb[18].mxu0 }
 0xcfa   : > { %v2272_v21 = vpop.f32.mrb[19].mxu0  ;;  %2202 = vmatmul.mubr.msk.f32.gmra.mrb[22].mxu0 %vm775_vm12, %v1687_v20  ;;  %v411_v20 = vld [vmem:[%s3211_s6 + $0x48] sm:$0xff] }
 0xcfb   : > { %v412_v21 = vld [vmem:[%s3211_s6 + $0x50] sm:$0xff]  ;;  %v2350_v24 = vpack.c.bf16 %v411_v20, %v410_v17 }
 0xd01   : > { %v1774_v10 = vpop.f32.mrb[20].mxu0 }
 0xd02   : > { %v1775_v41 = vadd.f32 %v1774_v10, %v1695_v25  ;;  %v1776_v35 = vpop.f32.mrb[21].mxu0  ;;  %v414_v10 = vld [vmem:[%s3211_s6 + $0x60] sm:$0xff] }
 0xd03   : > { %v1777_v37 = vadd.f32 %v1776_v35, %v1699_v26 }
 0xd04   : > { %v1785_v32 = vadd.f32 %v1775_v41, %v2938_v48  ;;  %v415_v41 = vld [vmem:[%s3211_s6 + $0x68] sm:$0xff] }
 0xd05   : > { %v1786_v44 = vadd.f32 %v1777_v37, %v2936_v47  ;;  %v2356_v35 = vpack.c.bf16 %v415_v41, %v414_v10  ;;  %v416_v37 = vld [vmem:[%s3211_s6 + $0x70] sm:$0xff] }
 0xd07   : > { %v1789_v36 = vsel %vm484_vm9, %v1786_v44, 0.0 }
 0xd08   : > { %v1790_v42 = vadd.f32 %v1789_v36, %v1785_v32  ;;  %v418_v36 = vld [vmem:[%s3211_s6 + $0x80] sm:$0x1f] }
 0xd0a   : > { %1791 = vadd.xlane.f32.xlu1 %v1790_v42 }
 0xd97   : > { %v1792_v43 = vpop.xlane.xlu1 %1791 }
 0xd98   : > { %v1797_v45 = vmul.f32 0.007518797, %v1792_v43 }
 0xd9a   : > { %v3025_v49 = vsub.f32 %v1785_v32, %v1797_v45  ;;  %v3027_v50 = vsub.f32 %v1786_v44, %v1797_v45  ;;  %v417_v44 = vld [vmem:[%s3211_s6 + $0x78] sm:$0xff] }
 0xd9b   : > { %v2359_v32 = vpack.c.bf16 %v417_v44, %v416_v37 }
 0xd9c   : > { %v1803_v52 = vmul.f32 %v3025_v49, %v3025_v49  ;;  %v1804_v51 = vmul.f32 %v3027_v50, %v3027_v50 }
 0xd9e   : > { %v1807_v47 = vsel %vm484_vm9, %v1804_v51, 0.0  ;;  %v2139_v51 = vld [vmem:[%s3210_s5 + $0x5] ss:$8 sm:$0x3] }
 0xd9f   : > { %v1808_v53 = vadd.f32 %v1807_v47, %v1803_v52 }
 0xda1   : > { %1809 = vadd.xlane.f32.xlu0 %v1808_v53  ;;  %v1829_v53 = vrot.slane %v2139_v51, %v2609_v4 }
 0xdcd   : > { %v1780_v48 = vpop.f32.mrb[22].mxu0 }
 0xdce   : > { %v1781_v54 = vadd.f32 %v1780_v48, %v1695_v25  ;;  %v1782_v55 = vpop.f32.mrb[23].mxu0  ;;  %v413_v25 = vld [vmem:[%s3211_s6 + $0x58] sm:$0xff] }
 0xdcf   : > { %v1783_v56 = vadd.f32 %v1782_v55, %v1699_v26  ;;  %v2353_v26 = vpack.c.bf16 %v413_v25, %v412_v21 }
 0xdd0   : > { %v1787_v58 = vadd.f32 %v1781_v54, %v2966_v38  ;;  %v402_v38 = vld [vmem:[%s3211_s6] sm:$0xff] }
 0xdd1   : > { %v1788_v57 = vadd.f32 %v1783_v56, %v2964_v31  ;;  %v2338_v6 = vpack.c.bf16 %v403_v3, %v402_v38 }
 0xdd3   : > { %v1793_v59 = vsel %vm484_vm9, %v1788_v57, 0.0  ;;  %2339 = vmatpush1.bf16.msra.mxu1 %v2338_v6 }
 0xdd4   : > { %v1794_v60 = vadd.f32 %v1793_v59, %v1787_v58  ;;  %2340 = vmatprep.subr.bf16.mxu1 %v2500_v46 }
 0xdd6   : > { %1795 = vadd.xlane.f32.xlu1 %v1794_v60 }
 0xdd7   : > { %2342 = vmatpush1.bf16.msra.mxu1 %v2341_v8 }
 0xdd8   : > { %2343 = vmatprep.subr.bf16.mxu1 %v2500_v46 }
 0xddb   : > { %2345 = vmatpush1.bf16.msra.mxu1 %v2344_v13 }
 0xddc   : > { %2346 = vmatprep.subr.bf16.mxu1 %v2500_v46 }
 0xddf   : > { %2348 = vmatpush1.bf16.msra.mxu1 %v2347_v16 }
 0xde0   : > { %2349 = vmatprep.subr.bf16.mxu1 %v2500_v46 }
 0xde3   : > { %2351 = vmatpush1.bf16.msra.mxu1 %v2350_v24 }
 0xde4   : > { %2352 = vmatprep.subr.bf16.mxu1 %v2500_v46 }
 0xde7   : > { %2354 = vmatpush1.bf16.msra.mxu1 %v2353_v26 }
 0xde8   : > { %2355 = vmatprep.subr.bf16.mxu1 %v2500_v46 }
 0xdeb   : > { %2357 = vmatpush1.bf16.msra.mxu1 %v2356_v35 }
 0xdec   : > { %2358 = vmatprep.subr.bf16.mxu1 %v2500_v46  ;;  %v1833_v46 = vrot.slane %v2139_v51, %v2612_v5 }
 0xdef   : > { %2360 = vmatpush1.bf16.msra.mxu1 %v2359_v32 }
 0xdf0   : > { %1966 = vmatprep.subr.mxu1 %v2498_v1  ;;  %v2140_v1 = vld [vmem:[%s3210_s5 + $0x6] ss:$8 sm:$0x3] }
 0xdf1   : > { %v1848_v54 = vrot.slane %v2140_v1, %v2612_v5  ;;  %v1844_v56 = vrot.slane %v2140_v1, %v2609_v4 }
 0xdf3   : > { %2204 = vmatpush1.msk.msra.mxu1 %vm693_vm10, %v418_v36 }
 0xe2e   : > { %v1810_v42 = vpop.xlane.xlu0 %1809 }
 0xe2f   : > { %v1815_v43 = vmul.f32 0.007518797, %v1810_v42 }
 0xe31   : > { %v1817_v45 = vadd.f32 1e-06, %v1815_v43 }
 0xe33   : > { %2428 = vrsqrt.f32 %v1817_v45 }
 0xe3d   : > { %v2429_v52 = vpop.eup %2428 }
 0xe3e   : > { %v1822_v47 = vmul.f32 %v2429_v52, %v3027_v50  ;;  %v1821_v48 = vmul.f32 %v2429_v52, %v3025_v49 }
 0xe40   : > { %v1837_v55 = vmul.f32 %v1833_v46, %v1822_v47 }
 0xe63   : > { %v1796_v61 = vpop.xlane.xlu1 %1795 }
 0xe64   : > { %v1798_v62 = vmul.f32 0.007518797, %v1796_v61 }
 0xe66   : > { %v3037_v19 = vsub.f32 %v1787_v58, %v1798_v62  ;;  %v3039_v39 = vsub.f32 %v1788_v57, %v1798_v62  ;;  %v1836_v57 = vmul.f32 %v1829_v53, %v1821_v48  ;;  %v1852_v58 = vadd.f32 %v1848_v54, %v1837_v55 }
 0xe68   : > { %v1805_v12 = vmul.f32 %v3037_v19, %v3037_v19  ;;  %v1806_v63 = vmul.f32 %v3039_v39, %v3039_v39  ;;  %v1851_v61 = vadd.f32 %v1844_v56, %v1836_v57  ;;  %v1856_v50 = vsel %vm2648_vm0, %v1852_v58, 0.0 }
 0xe69   : > { %v1871_v62 = vsel %vm2653_vm1, %v1852_v58, 0.0  ;;  %v1863_v49 = vsel %vm484_vm9, %v1856_v50, 0.0  ;;  %vm1915_vm0 = vcmask 1040384   ;;  %vm1918_vm1 = vcmask 1041408  }
 0xe6a   : > { %v1811_v31 = vsel %vm484_vm9, %v1806_v63, 0.0  ;;  %v1855_v5 = vsel %vm454_vm2, %v1851_v61, 0.0  ;;  %v1870_v4 = vsel %vm472_vm3, %v1851_v61, 0.0  ;;  %v1878_v63 = vsel %vm484_vm9, %v1871_v62, 0.0 }
 0xe6b   : > { %v1812_v18 = vadd.f32 %v1811_v31, %v1805_v12  ;;  %v1857_v31 = vrot.slane %v1855_v5, 4  ;;  %v1872_v29 = vrot.slane %v1870_v4, 4  ;;  %v1879_v38 = vrot.slane %v1878_v63, 4 }
 0xe6c   : > { %vm1921_vm2 = vcmask 1042432  }
 0xe6d   : > { %1813 = vadd.xlane.f32.xlu1 %v1812_v18  ;;  %v1864_v18 = vrot.slane %v1863_v49, 4  ;;  %v1880_v3 = vadd.f32 %v1879_v38, %v1878_v63  ;;  %v1858_v6 = vadd.f32 %v1857_v31, %v1855_v5  ;;  %v1873_v40 = vadd.f32 %v1872_v29, %v1870_v4 }
 0xe6f   : > { %v1865_v30 = vadd.f32 %v1864_v18, %v1863_v49  ;;  %v1881_v23 = vrot.slane %v1880_v3, 2  ;;  %v1859_v11 = vrot.slane %v1858_v6, 2  ;;  %v1874_v13 = vrot.slane %v1873_v40, 2 }
 0xe71   : > { %v1866_v9 = vrot.slane %v1865_v30, 2  ;;  %v1882_v21 = vadd.f32 %v1881_v23, %v1880_v3  ;;  %v1860_v24 = vadd.f32 %v1859_v11, %v1858_v6  ;;  %v1875_v25 = vadd.f32 %v1874_v13, %v1873_v40  ;;  %v2203_v3 = vld [vmem:[%s3212_s7] ss:$0 sm:$0xff] }
 0xe73   : > { %v1867_v20 = vadd.f32 %v1866_v9, %v1865_v30  ;;  %v1861_v36 = vrot.slane %v1860_v24, 1  ;;  %v1876_v42 = vrot.slane %v1875_v25, 1  ;;  %v1883_v51 = vrot.slane %v1882_v21, 1 }
 0xe74   : > { %v2005_v30 = vand.u32 127, %v422_v0 }
 0xe75   : > { %v1868_v27 = vrot.slane %v1867_v20, 1  ;;  %v1862_v1 = vadd.f32 %v1861_v36, %v1860_v24  ;;  %v1884_v58 = vadd.f32 %v1883_v51, %v1882_v21  ;;  %v2206_v21 = vld [vmem:[%s3212_s7 + $0x1] ss:$0 sm:$0xff] }
 0xe76   : > { %vm2006_vm3 = vcmp.lt.s32.totalorder %v2005_v30, 64 }
 0xe77   : > { %v1869_v57 = vadd.f32 %v1868_v27, %v1867_v20 }
 0xe79   : > { %v1917_v63 = vsel %vm1915_vm0, %v1869_v57, %v1884_v58 }
 0xefa   : > { %v1814_v59 = vpop.xlane.xlu1 %1813 }
 0xefb   : > { %v1816_v60 = vmul.f32 0.007518797, %v1814_v59 }
 0xefd   : > { %v1818_v12 = vadd.f32 1e-06, %v1816_v60 }
 0xeff   : > { %2430 = vrsqrt.f32 %v1818_v12 }
 0xf09   : > { %v2431_v7 = vpop.eup %2430 }
 0xf0a   : > { %v1823_v22 = vmul.f32 %v2431_v7, %v3037_v19  ;;  %v1824_v8 = vmul.f32 %v2431_v7, %v3039_v39 }
 0xf0c   : > { %v1838_v14 = vmul.f32 %v1829_v53, %v1823_v22  ;;  %v1839_v15 = vmul.f32 %v1833_v46, %v1824_v8  ;;  %v1877_v53 = vadd.f32 %v1876_v42, %v1875_v25  ;;  %v2207_v25 = vld [vmem:[%s3212_s7 + $0x2] ss:$0 sm:$0xff] }
 0xf0e   : > { %v1853_v16 = vadd.f32 %v1844_v56, %v1838_v14  ;;  %v1854_v17 = vadd.f32 %v1848_v54, %v1839_v15  ;;  %v1916_v12 = vsel %vm1915_vm0, %v1862_v1, %v1877_v53 }
 0xf10   : > { %v1886_v26 = vsel %vm2668_vm5, %v1854_v17, 0.0  ;;  %v1901_v19 = vsel %vm2673_vm6, %v1854_v17, 0.0  ;;  %v1885_v39 = vsel %vm579_vm7, %v1853_v16, 0.0  ;;  %v1900_v10 = vsel %vm597_vm8, %v1853_v16, 0.0 }
 0xf11   : > { %v1893_v41 = vsel %vm484_vm9, %v1886_v26, 0.0  ;;  %v1908_v35 = vsel %vm484_vm9, %v1901_v19, 0.0  ;;  %v1887_v37 = vrot.slane %v1885_v39, 4  ;;  %v1902_v44 = vrot.slane %v1900_v10, 4 }
 0xf12   : > { %v1894_v32 = vrot.slane %v1893_v41, 4  ;;  %v1909_v33 = vrot.slane %v1908_v35, 4  ;;  %vm2008_vm5 = vcmask 1043456  }
 0xf13   : > { %v1888_v34 = vadd.f32 %v1887_v37, %v1885_v39  ;;  %v1903_v43 = vadd.f32 %v1902_v44, %v1900_v10 }
 0xf14   : > { %v1895_v45 = vadd.f32 %v1894_v32, %v1893_v41  ;;  %v1910_v52 = vadd.f32 %v1909_v33, %v1908_v35 }
 0xf15   : > { %v1889_v46 = vrot.slane %v1888_v34, 2  ;;  %v1904_v47 = vrot.slane %v1903_v43, 2 }
 0xf16   : > { %v1896_v2 = vrot.slane %v1895_v45, 2  ;;  %v1911_v28 = vrot.slane %v1910_v52, 2 }
 0xf17   : > { %v1890_v48 = vadd.f32 %v1889_v46, %v1888_v34  ;;  %v1905_v54 = vadd.f32 %v1904_v47, %v1903_v43 }
 0xf18   : > { %v1897_v55 = vadd.f32 %v1896_v2, %v1895_v45  ;;  %v1912_v56 = vadd.f32 %v1911_v28, %v1910_v52 }
 0xf19   : > { %v1891_v59 = vrot.slane %v1890_v48, 1  ;;  %v1906_v60 = vrot.slane %v1905_v54, 1 }
 0xf1a   : > { %v1898_v61 = vrot.slane %v1897_v55, 1  ;;  %v1913_v50 = vrot.slane %v1912_v56, 1 }
 0xf1b   : > { %v1892_v62 = vadd.f32 %v1891_v59, %v1890_v48  ;;  %v1907_v49 = vadd.f32 %v1906_v60, %v1905_v54 }
 0xf1c   : > { %v1899_v5 = vadd.f32 %v1898_v61, %v1897_v55  ;;  %v1914_v4 = vadd.f32 %v1913_v50, %v1912_v56 }
 0xf1d   : > { %v1919_v31 = vsel %vm1918_vm1, %v1916_v12, %v1892_v62 }
 0xf1e   : > { %v1920_v29 = vsel %vm1918_vm1, %v1917_v63, %v1899_v5  ;;  %v1922_v38 = vsel %vm1921_vm2, %v1919_v31, %v1907_v49 }
 0xf1f   : > { %v1923_v18 = vsel %vm1921_vm2, %v1920_v29, %v1914_v4 }
 0xf20   : > { %2205 = vmatprep.mubr.msk.f32.mxu1 %vm484_vm9, %v1923_v18 }
 0xf21   : > { %1999 = vmatmul.mubr.f32.vlgmr.msra.gmra.mrb[12].mxu1 %v1922_v38 }
 0xff4   : > { %v2000_v6 = vpop.f32.mrb[12].mxu1 }
 0xff5   : > { %v2001_v40 = vadd.f32 %v2203_v3, %v2000_v6  ;;  %v2002_v7 = vpop.f32.mrb[13].mxu1 }
 0xff7   : > { %v2007_v22 = vsel %vm2006_vm3, %v2001_v40, 0.0 }
 0xff8   : > { %v2009_v8 = vsel %vm2008_vm5, %v2007_v22, 0.0 }
 0xff9   : > { %2010 = vadd.xlane.f32.xlu1 %v2009_v8 }
0x1086   : > { %v2011_v9 = vpop.xlane.xlu1 %2010 }
0x1087   : > { %v2012_v23 = vmul.f32 0.015625, %v2011_v9 }
0x1089   : > { %v2013_v11 = vsub.f32 %v2001_v40, %v2012_v23 }
0x108b   : > { %v2014_v13 = vsel %vm2006_vm3, %v2013_v11, 0.0 }
0x108c   : > { %v2015_v14 = vmul.f32 %v2014_v13, %v2014_v13 }
0x108e   : > { %v2016_v0 = vsel %vm2008_vm5, %v2015_v14, 0.0 }
0x108f   : > { %2017 = vadd.xlane.f32.xlu1 %v2016_v0 }
0x111c   : > { %v2018_v15 = vpop.xlane.xlu1 %2017 }
0x111d   : > { %v2019_v16 = vmul.f32 0.015625, %v2018_v15 }
0x111f   : > { %v2020_v17 = vadd.f32 1e-05, %v2019_v16 }
0x1121   : > { %2432 = vrsqrt.f32 %v2020_v17 }
0x112b   : > { %v2433_v20 = vpop.eup %2432 }
0x112c   : > { %v2022_v24 = vmul.f32 %v2433_v20, %v2013_v11 }
0x112e   : > { %v2027_v26 = vmul.f32 %v2206_v21, %v2022_v24 }
0x1130   : > { %v2032_v19 = vadd.f32 %v2207_v25, %v2027_v26 }
0x1132   : > { %2033 = vst [vmem:[%s319_s12] sm:$0xf] %v2032_v19  }
0x1133   : > { %2447 = shalt.err (!%p2444_p3)
}
0x1134   : > { %s2448_s21 = scalar_lea.hbm %s3160_s25, 64  ;;  %s2452_s26 = scalar_lea.hbm %s3213_s8, 128 }
0x1135   : > { %p2449_p4 = scmp.ne.s32.totalorder %s3160_s25, %s2448_s21  ;;  %p2453_p9 = scmp.lt.u32.totalorder %s3160_s25, %s3213_s8 }
0x1136   : > { %p2454_p10 = scmp.lt.u32.totalorder %s2452_s26, %s2448_s21  ;;  %p2456_p12 = scmp.lt.u32.totalorder %s2448_s21, %s3160_s25 }
0x1137   : > { %p2450_p7 = pnand %p2449_p4, %p2590_p5 }
0x1138   : > { %p2455_p11 = por %p2454_p10, %p2453_p9 }
0x1139   : > { %p2451_p8 = pneg %p2450_p7 }
0x113a   : > { %p2457_p13 = por %p2456_p12, %p2455_p11 }
0x113c   : > { %p2458_p0 = pnand %p2457_p13, %p2451_p8 }
0x113e   : > { %2461 = shalt.err (!%p2458_p0)
}
0x113f   : > { %s2505_s19 = smov 32   ;;  %s2506_s20 = smov 2  }
0x1140   : > { %2361 = dma.vmem_to_hbm [thread:$0]  (%p2590_p5), %s3162_s13, 64, %s3160_s25, %s3164_s9, %s2505_s19, %s2505_s19, %s2506_s20  }
0x1141 PF: > { %p2367_p1 = scmp.ge.s32.totalorder %s2496_s30, 2  ;;  %s2065_s22 = sand.u32 1, %s2484_s27  }
0x1142   : > { %s2066_s23 = scalar_lea.sflag [#allocation3], %s2065_s22 }
0x1143   : > { %p2364_p2 = pnand %p2367_p1, %p2594_p6 }
0x1145   : > { %2479 = dma.done.wait (!%p2364_p2), %s2066_s23, 64  }
0x1146   : > { %2481 = vsyncadd (!%p2364_p2), %s2066_s23, 4294967232  ;;  %p18_p3 = scmp.ge.s32.totalorder %s2577_s11, 4   ;;  %s3224_s27 = smov %s2488_s28 }
0x1147   : > { %s3225_s28 = smov %s2492_s29  ;;  %s3226_s29 = smov %s2588_s14 }
0x1148   : > { %s3227_s30 = smov %s2577_s11  ;;  %20 = sbr.rel (!%p18_p3) target bundleno = 3 (0x3), region = 100 }
0x114f   :  { %2071 = vsyncpa [#allocation3], 1 }
0x1150   :  { %2073 = vsyncpa [#allocation3 + $0x1], 1 }

</bundles_post_ra>
